<compile_context>
chip_gen: v5e
topology: v5e:2x2
jax: 0.10.0
libtpu: 0.0.40
codegen_flags: <defaults>
</compile_context>

<pallas_src>
import jax
import jax.numpy as jnp
from jax.experimental import pallas as pl
from jax.experimental.pallas import tpu as pltpu

MLP = [256, 128, 64, 32, 5]   # classify(mlp=[256,128,64,32] + [5])
BN_EPS = 1e-5
TN_TARGET = 2048              # points per grid step (lane axis); sweep 1024-4096
COMPUTE_DTYPE = jnp.bfloat16  # HBM input stream + MXU operand dtype (f32 accum)
OUT_DTYPE = jnp.bfloat16      # logits stream dtype


def _round_up(x, m):
    return ((x + m - 1) // m) * m


def _choose_tn(batch, n, target=TN_TARGET):
    """Pick the point-tile width.

    Big enough to amortize the fixed per-step pipeline overhead, but capped by
    the real N (avoid padding waste) and shrunk if necessary so the grid keeps
    >= 2 parallel steps for v7x megacore sharding.  Always a multiple of 128.
    """
    tn = min(_round_up(target, 128), _round_up(n, 128))
    while tn > 128 and batch * pl.cdiv(_round_up(n, 128), tn) < 2:
        tn = _round_up(max(tn // 2, 128), 128)
    return tn


def _vmem_limit_bytes(tn, params):
    """Explicit scoped-VMEM budget for the chosen tile.

    Double-buffered input/output streams + (double-buffered) resident weights
    + f32 layer intermediates, with 2x headroom.  Floor 32 MiB (above v5e's
    16 MiB default scoped cap), ceiling 48 MiB (below v7x's 64 MiB physical).
    """
    in_buf = MLP[0] * tn * jnp.dtype(COMPUTE_DTYPE).itemsize
    out_buf = max(MLP[-1], 8) * tn * jnp.dtype(OUT_DTYPE).itemsize
    w_bytes = sum(w.size * w.dtype.itemsize + b.size * b.dtype.itemsize
                  for (w, b) in params)
    inter = sum(MLP[1:-1]) * tn * 4
    need = 2 * (in_buf + out_buf + w_bytes) + 2 * inter
    return int(min(48 * 1024 * 1024, max(32 * 1024 * 1024, 2 * need)))


# ----------------------------------------------------------------------------
# Pallas kernel: fused 4-layer pointwise MLP (Conv1d(k=1) + folded BN + ReLU)
# Operates channel-major: x tile is (Cin=256, TN), weights are (Cout, Cin).
# ----------------------------------------------------------------------------
def head_kernel(x_ref, w1, b1, w2, b2, w3, b3, w4, b4, o_ref):
    x = x_ref[...].astype(w1.dtype)                                  # (256, TN)
    # layer 1: 256 -> 128, BN folded into (w1, b1), ReLU
    h = jnp.dot(w1[...], x, preferred_element_type=jnp.float32) + b1[...]
    h = jnp.maximum(h, 0.0).astype(w2.dtype)                         # (128, TN)
    # layer 2: 128 -> 64
    h = jnp.dot(w2[...], h, preferred_element_type=jnp.float32) + b2[...]
    h = jnp.maximum(h, 0.0).astype(w3.dtype)                         # (64, TN)
    # layer 3: 64 -> 32
    h = jnp.dot(w3[...], h, preferred_element_type=jnp.float32) + b3[...]
    h = jnp.maximum(h, 0.0).astype(w4.dtype)                         # (32, TN)
    # layer 4 (logits): 32 -> 5, no BN / no ReLU
    logits = jnp.dot(w4[...], h, preferred_element_type=jnp.float32) + b4[...]
    o_ref[...] = logits.astype(o_ref.dtype)                          # (5, TN)


def head_pallas(points, params, tn_target=TN_TARGET):
    """points: (B, 256, N).  Returns (B, 5, N_pad) in OUT_DTYPE."""
    B, C, N = points.shape
    assert C == MLP[0]
    # Enforce a bf16 HBM input stream: the kernel is HBM-read-bound and the MXU
    # operands are bf16 anyway; streaming f32 would only double the traffic.
    points = points.astype(COMPUTE_DTYPE)

    tn = _choose_tn(B, N, tn_target)
    n_pad = _round_up(N, tn)
    if n_pad != N:
        points = jnp.pad(points, ((0, 0), (0, 0), (0, n_pad - N)))

    (w1, b1), (w2, b2), (w3, b3), (w4, b4) = params

    # Weight/bias blocks never change index (whole-array resident, ~52 KiB
    # total); default double-buffering of them is a negligible VMEM cost.
    wspec = lambda a: pl.BlockSpec(a.shape, lambda bi, ni: (0, 0))
    grid = (B, n_pad // tn)

    flops = 2 * B * n_pad * sum(ci * co for ci, co in zip(MLP[:-1], MLP[1:]))
    bytes_accessed = (
        points.size * points.dtype.itemsize                      # bf16 input
        + B * n_pad * MLP[-1] * jnp.dtype(OUT_DTYPE).itemsize    # bf16 logits
        + sum(w.size * w.dtype.itemsize + b.size * b.dtype.itemsize
              for (w, b) in params))

    return pl.pallas_call(
        head_kernel,
        out_shape=jax.ShapeDtypeStruct((B, MLP[-1], n_pad), OUT_DTYPE),
        grid_spec=pltpu.PrefetchScalarGridSpec(
            num_scalar_prefetch=0,
            grid=grid,
            in_specs=[
                # x tile: (C, TN), batch dim squeezed
                pl.BlockSpec((None, MLP[0], tn), lambda bi, ni: (bi, 0, ni)),
                wspec(w1), wspec(b1),
                wspec(w2), wspec(b2),
                wspec(w3), wspec(b3),
                wspec(w4), wspec(b4),
            ],
            out_specs=pl.BlockSpec((None, MLP[-1], tn),
                                   lambda bi, ni: (bi, 0, ni)),
        ),
        compiler_params=pltpu.CompilerParams(
            dimension_semantics=("parallel", "parallel"),
            vmem_limit_bytes=_vmem_limit_bytes(tn, params)),
        cost_estimate=pl.CostEstimate(flops=flops, transcendentals=0,
                                      bytes_accessed=bytes_accessed),
    )(points, w1, b1, w2, b2, w3, b3, w4, b4)


# ----------------------------------------------------------------------------
# Wrapper matching the PyTorch forward: points (B, 256, N) -> logits (B, 5, N)
# ----------------------------------------------------------------------------
@jax.jit
def head_forward(points, params_flat):
    params = [(params_flat[2 * i], params_flat[2 * i + 1]) for i in range(4)]
    B, C, N = points.shape
    assert C == MLP[0]
    out = head_pallas(points, params)          # (B, 5, N_pad)
    return out[:, :, :N]


# ----------------------------------------------------------------------------
# Parameter construction (deterministic, synthetic) + eval-mode BN folding
# ----------------------------------------------------------------------------
def make_params(key):
    """Returns (kernel_params, master_params).

    kernel_params: list of (W_folded (Cout,Cin) bf16, b_folded (Cout,1) f32)
    master_params: same values in f32 (for the reference).
    """
    # TODO(synk): training-mode BatchNorm (batch statistics) is not modeled;
    # eval-mode running stats are folded into the conv weights.
    kernel_params, master_params = [], []
    n_layers = len(MLP) - 1
    for li in range(n_layers):
        cin, cout = MLP[li], MLP[li + 1]
        key, kw, kb, kg, kbeta, km, kv = jax.random.split(key, 7)
        bound = 1.0 / jnp.sqrt(cin)
        W = jax.random.uniform(kw, (cout, cin), jnp.float32, -bound, bound)
        b = jax.random.uniform(kb, (cout,), jnp.float32, -bound, bound)
        if li < n_layers - 1:
            gamma = 1.0 + 0.1 * jax.random.normal(kg, (cout,), jnp.float32)
            beta = 0.1 * jax.random.normal(kbeta, (cout,), jnp.float32)
            mean = 0.1 * jax.random.normal(km, (cout,), jnp.float32)
            var = 1.0 + 0.5 * jax.random.uniform(kv, (cout,), jnp.float32)
            scale = gamma / jnp.sqrt(var + BN_EPS)
            Wf = W * scale[:, None]
            bf = (b - mean) * scale + beta
        else:
            Wf, bf = W, b
        master_params.append((Wf, bf[:, None]))
        kernel_params.append((Wf.astype(COMPUTE_DTYPE),
                              bf[:, None].astype(jnp.float32)))
    return kernel_params, master_params


def head_reference(points_f32, master_params):
    """Pure-JAX reference emulating the kernel's bf16 operands / f32 accumulate."""
    q = lambda a: a.astype(COMPUTE_DTYPE).astype(jnp.float32)
    h = q(points_f32.astype(jnp.float32))                    # (B, C, N)
    for i, (W, b) in enumerate(master_params):
        h = jnp.einsum('oc,bcn->bon', q(W), h,
                       preferred_element_type=jnp.float32) + b[None]
        if i < len(master_params) - 1:
            h = q(jnp.maximum(h, 0.0))
    return h


if __name__ == "__main__":
    key = jax.random.PRNGKey(0)
    kp, kx = jax.random.split(key)

    kernel_params, master_params = make_params(kp)
    params_flat = tuple(t for pair in kernel_params for t in pair)

    # Small but multi-tile input: batch=2, C=256 (mlp[0]), N=768 points.
    # The adaptive tile picks TN=768 here (no padding waste) and the grid is
    # (2, 1) -> 2 parallel steps, so v7x megacore sharding is still exercised.
    B, N = 2, 768
    points_f32 = jax.random.normal(kx, (B, MLP[0], N), dtype=jnp.float32)

    # Pass f32 points: the wrapper enforces the bf16 HBM stream itself.
    logits = head_forward(points_f32, params_flat)
    logits = jax.block_until_ready(logits)
    assert logits.shape == (B, MLP[-1], N), logits.shape
    assert logits.dtype == OUT_DTYPE, logits.dtype

    ref = head_reference(points_f32, master_params)
    ref_q = ref.astype(OUT_DTYPE).astype(jnp.float32)        # match bf16 output
    got = logits.astype(jnp.float32)
    max_err = float(jnp.max(jnp.abs(got - ref_q)))
    assert jnp.allclose(got, ref_q, atol=2e-2, rtol=2e-2), max_err

    print("KERNEL_OK")
</pallas_src>

<mosaic_0001>
module attributes {stable_mosaic.version = 11 : i64} {
  func.func @head_kernel(%arg0: i32, %arg1: i32, %arg2: memref<1x256x768xbf16, #tpu.memory_space<vmem>>, %arg3: memref<128x256xbf16, #tpu.memory_space<vmem>>, %arg4: memref<128x1xf32, #tpu.memory_space<vmem>>, %arg5: memref<64x128xbf16, #tpu.memory_space<vmem>>, %arg6: memref<64x1xf32, #tpu.memory_space<vmem>>, %arg7: memref<32x64xbf16, #tpu.memory_space<vmem>>, %arg8: memref<32x1xf32, #tpu.memory_space<vmem>>, %arg9: memref<5x32xbf16, #tpu.memory_space<vmem>>, %arg10: memref<5x1xf32, #tpu.memory_space<vmem>>, %arg11: memref<1x5x768xbf16, #tpu.memory_space<vmem>>) attributes {dimension_semantics = [#tpu.dimension_semantics<parallel>, #tpu.dimension_semantics<parallel>], iteration_bounds = array<i64: 2, 1>, scalar_prefetch = 0 : i64, scratch_operands = 0 : i64, tpu.core_type = #tpu.core_type<tc>, window_params = [{transform_indices = @transform_0, window_bounds = array<i64: 1, 256, 768>}, {pipeline_mode = #tpu.pipeline_mode<synchronous>, transform_indices = @transform_1, window_bounds = array<i64: 128, 256>}, {pipeline_mode = #tpu.pipeline_mode<synchronous>, transform_indices = @transform_2, window_bounds = array<i64: 128, 1>}, {pipeline_mode = #tpu.pipeline_mode<synchronous>, transform_indices = @transform_3, window_bounds = array<i64: 64, 128>}, {pipeline_mode = #tpu.pipeline_mode<synchronous>, transform_indices = @transform_4, window_bounds = array<i64: 64, 1>}, {pipeline_mode = #tpu.pipeline_mode<synchronous>, transform_indices = @transform_5, window_bounds = array<i64: 32, 64>}, {pipeline_mode = #tpu.pipeline_mode<synchronous>, transform_indices = @transform_6, window_bounds = array<i64: 32, 1>}, {pipeline_mode = #tpu.pipeline_mode<synchronous>, transform_indices = @transform_7, window_bounds = array<i64: 5, 32>}, {pipeline_mode = #tpu.pipeline_mode<synchronous>, transform_indices = @transform_8, window_bounds = array<i64: 5, 1>}, {transform_indices = @transform_9, window_bounds = array<i64: 1, 5, 768>}]} {
    %c0 = arith.constant 0 : index
    %c0_0 = arith.constant 0 : index
    %c0_1 = arith.constant 0 : index
    %0 = vector.load %arg2[%c0, %c0_0, %c0_1] : memref<1x256x768xbf16, #tpu.memory_space<vmem>>, vector<1x256x768xbf16>
    %1 = vector.shape_cast %0 : vector<1x256x768xbf16> to vector<256x768xbf16>
    %c0_2 = arith.constant 0 : index
    %c0_3 = arith.constant 0 : index
    %2 = vector.load %arg3[%c0_2, %c0_3] : memref<128x256xbf16, #tpu.memory_space<vmem>>, vector<128x256xbf16>
    %cst = arith.constant dense<0.000000e+00> : vector<128x768xf32>
    %3 = tpu.matmul %2, %1, %cst {dimension_numbers = #tpu.dot_dimension_numbers<[1], [0], [0], [1], [0, 0, 1, 1], [], []>} : vector<128x256xbf16>, vector<256x768xbf16>, vector<128x768xf32> -> vector<128x768xf32>
    %c0_4 = arith.constant 0 : index
    %c0_5 = arith.constant 0 : index
    %4 = vector.load %arg4[%c0_4, %c0_5] : memref<128x1xf32, #tpu.memory_space<vmem>>, vector<128x1xf32>
    %5 = vector.broadcast %4 : vector<128x1xf32> to vector<128x768xf32>
    %6 = arith.addf %3, %5 : vector<128x768xf32>
    %cst_6 = arith.constant 0.000000e+00 : f32
    %7 = vector.broadcast %cst_6 : f32 to vector<128x768xf32>
    %8 = arith.maximumf %6, %7 : vector<128x768xf32>
    %9 = arith.truncf %8 : vector<128x768xf32> to vector<128x768xbf16>
    %c0_7 = arith.constant 0 : index
    %c0_8 = arith.constant 0 : index
    %10 = vector.load %arg5[%c0_7, %c0_8] : memref<64x128xbf16, #tpu.memory_space<vmem>>, vector<64x128xbf16>
    %cst_9 = arith.constant dense<0.000000e+00> : vector<64x768xf32>
    %11 = tpu.matmul %10, %9, %cst_9 {dimension_numbers = #tpu.dot_dimension_numbers<[1], [0], [0], [1], [0, 0, 1, 1], [], []>} : vector<64x128xbf16>, vector<128x768xbf16>, vector<64x768xf32> -> vector<64x768xf32>
    %c0_10 = arith.constant 0 : index
    %c0_11 = arith.constant 0 : index
    %12 = vector.load %arg6[%c0_10, %c0_11] : memref<64x1xf32, #tpu.memory_space<vmem>>, vector<64x1xf32>
    %13 = vector.broadcast %12 : vector<64x1xf32> to vector<64x768xf32>
    %14 = arith.addf %11, %13 : vector<64x768xf32>
    %cst_12 = arith.constant 0.000000e+00 : f32
    %15 = vector.broadcast %cst_12 : f32 to vector<64x768xf32>
    %16 = arith.maximumf %14, %15 : vector<64x768xf32>
    %17 = arith.truncf %16 : vector<64x768xf32> to vector<64x768xbf16>
    %c0_13 = arith.constant 0 : index
    %c0_14 = arith.constant 0 : index
    %18 = vector.load %arg7[%c0_13, %c0_14] : memref<32x64xbf16, #tpu.memory_space<vmem>>, vector<32x64xbf16>
    %cst_15 = arith.constant dense<0.000000e+00> : vector<32x768xf32>
    %19 = tpu.matmul %18, %17, %cst_15 {dimension_numbers = #tpu.dot_dimension_numbers<[1], [0], [0], [1], [0, 0, 1, 1], [], []>} : vector<32x64xbf16>, vector<64x768xbf16>, vector<32x768xf32> -> vector<32x768xf32>
    %c0_16 = arith.constant 0 : index
    %c0_17 = arith.constant 0 : index
    %20 = vector.load %arg8[%c0_16, %c0_17] : memref<32x1xf32, #tpu.memory_space<vmem>>, vector<32x1xf32>
    %21 = vector.broadcast %20 : vector<32x1xf32> to vector<32x768xf32>
    %22 = arith.addf %19, %21 : vector<32x768xf32>
    %cst_18 = arith.constant 0.000000e+00 : f32
    %23 = vector.broadcast %cst_18 : f32 to vector<32x768xf32>
    %24 = arith.maximumf %22, %23 : vector<32x768xf32>
    %25 = arith.truncf %24 : vector<32x768xf32> to vector<32x768xbf16>
    %c0_19 = arith.constant 0 : index
    %c0_20 = arith.constant 0 : index
    %26 = vector.load %arg9[%c0_19, %c0_20] : memref<5x32xbf16, #tpu.memory_space<vmem>>, vector<5x32xbf16>
    %cst_21 = arith.constant dense<0.000000e+00> : vector<5x768xf32>
    %27 = tpu.matmul %26, %25, %cst_21 {dimension_numbers = #tpu.dot_dimension_numbers<[1], [0], [0], [1], [0, 0, 1, 1], [], []>} : vector<5x32xbf16>, vector<32x768xbf16>, vector<5x768xf32> -> vector<5x768xf32>
    %c0_22 = arith.constant 0 : index
    %c0_23 = arith.constant 0 : index
    %28 = vector.load %arg10[%c0_22, %c0_23] : memref<5x1xf32, #tpu.memory_space<vmem>>, vector<5x1xf32>
    %29 = vector.broadcast %28 : vector<5x1xf32> to vector<5x768xf32>
    %30 = arith.addf %27, %29 : vector<5x768xf32>
    %31 = arith.truncf %30 : vector<5x768xf32> to vector<5x768xbf16>
    %c0_24 = arith.constant 0 : index
    %c0_25 = arith.constant 0 : index
    %c0_26 = arith.constant 0 : index
    %32 = vector.load %arg11[%c0_24, %c0_25, %c0_26] : memref<1x5x768xbf16, #tpu.memory_space<vmem>>, vector<1x5x768xbf16>
    %33 = vector.shape_cast %32 : vector<1x5x768xbf16> to vector<5x768xbf16>
    %34 = vector.shape_cast %31 : vector<5x768xbf16> to vector<1x5x768xbf16>
    tpu.vector_store %arg11[%c0_24, %c0_25, %c0_26], %34 {strides = array<i32>} : memref<1x5x768xbf16, #tpu.memory_space<vmem>>, vector<1x5x768xbf16>,
    return
  }
  func.func @transform_0(%arg0: i32, %arg1: i32) -> (i32, i32, i32) {
    %c0_i32 = arith.constant 0 : i32
    %c0_i32_0 = arith.constant 0 : i32
    return %arg0, %c0_i32, %arg1 : i32, i32, i32
  }
  func.func @transform_1(%arg0: i32, %arg1: i32) -> (i32, i32) {
    %c0_i32 = arith.constant 0 : i32
    %c0_i32_0 = arith.constant 0 : i32
    %c0_i32_1 = arith.constant 0 : i32
    return %c0_i32, %c0_i32_0 : i32, i32
  }
  func.func @transform_2(%arg0: i32, %arg1: i32) -> (i32, i32) {
    %c0_i32 = arith.constant 0 : i32
    %c0_i32_0 = arith.constant 0 : i32
    %c0_i32_1 = arith.constant 0 : i32
    return %c0_i32, %c0_i32_0 : i32, i32
  }
  func.func @transform_3(%arg0: i32, %arg1: i32) -> (i32, i32) {
    %c0_i32 = arith.constant 0 : i32
    %c0_i32_0 = arith.constant 0 : i32
    %c0_i32_1 = arith.constant 0 : i32
    return %c0_i32, %c0_i32_0 : i32, i32
  }
  func.func @transform_4(%arg0: i32, %arg1: i32) -> (i32, i32) {
    %c0_i32 = arith.constant 0 : i32
    %c0_i32_0 = arith.constant 0 : i32
    %c0_i32_1 = arith.constant 0 : i32
    return %c0_i32, %c0_i32_0 : i32, i32
  }
  func.func @transform_5(%arg0: i32, %arg1: i32) -> (i32, i32) {
    %c0_i32 = arith.constant 0 : i32
    %c0_i32_0 = arith.constant 0 : i32
    %c0_i32_1 = arith.constant 0 : i32
    return %c0_i32, %c0_i32_0 : i32, i32
  }
  func.func @transform_6(%arg0: i32, %arg1: i32) -> (i32, i32) {
    %c0_i32 = arith.constant 0 : i32
    %c0_i32_0 = arith.constant 0 : i32
    %c0_i32_1 = arith.constant 0 : i32
    return %c0_i32, %c0_i32_0 : i32, i32
  }
  func.func @transform_7(%arg0: i32, %arg1: i32) -> (i32, i32) {
    %c0_i32 = arith.constant 0 : i32
    %c0_i32_0 = arith.constant 0 : i32
    %c0_i32_1 = arith.constant 0 : i32
    return %c0_i32, %c0_i32_0 : i32, i32
  }
  func.func @transform_8(%arg0: i32, %arg1: i32) -> (i32, i32) {
    %c0_i32 = arith.constant 0 : i32
    %c0_i32_0 = arith.constant 0 : i32
    %c0_i32_1 = arith.constant 0 : i32
    return %c0_i32, %c0_i32_0 : i32, i32
  }
  func.func @transform_9(%arg0: i32, %arg1: i32) -> (i32, i32, i32) {
    %c0_i32 = arith.constant 0 : i32
    %c0_i32_0 = arith.constant 0 : i32
    return %arg0, %c0_i32, %arg1 : i32, i32, i32
  }
}

</mosaic_0001>

<bundles_post_ra>
// kernel: head_forward.1
= control target key start
LH: loop header
LB: loop body
LE: loop exit
PB: predicated region body
PF: predicated region fallthrough
CT: control target
= control target key end

     0   :  { %s3311_s30 = smov 0   ;;  %s3313_s10 = smov 0   ;;  %s4439_s0 = inlined_call_operand.vmem [shape: bf16[2,256,768], index: 0, kind: input, shape index: {}]   ;;  %s4440_s1 = inlined_call_operand.vmem [shape: bf16[128,256], index: 1, kind: input, shape index: {}]   ;;  %s4441_s2 = inlined_call_operand.vmem [shape: f32[128,1], index: 2, kind: input, shape index: {}]   ;;  %s4442_s3 = inlined_call_operand.vmem [shape: bf16[64,128], index: 3, kind: input, shape index: {}]   ;;  %s4443_s4 = inlined_call_operand.vmem [shape: f32[64,1], index: 4, kind: input, shape index: {}]   ;;  %s4444_s5 = inlined_call_operand.vmem [shape: bf16[32,64], index: 5, kind: input, shape index: {}]   ;;  %s4445_s6 = inlined_call_operand.vmem [shape: f32[32,1], index: 6, kind: input, shape index: {}]   ;;  %s4446_s7 = inlined_call_operand.vmem [shape: bf16[5,32], index: 7, kind: input, shape index: {}]   ;;  %s4447_s8 = inlined_call_operand.vmem [shape: f32[5,1], index: 8, kind: input, shape index: {}]   ;;  %s4448_s9 = inlined_call_operand.vmem [shape: bf16[2,5,768], index: 9, kind: output, shape index: {}]  }
   0x1   :  { %s3315_s11 = smov 0  }
   0x2 LB: > { %s31_s12 = sadd.s32 1, %s3254_s10  ;;  %p2593_p0 = scmp.ge.s32.totalorder %s3258_s11, 1  ;;  %s3258_s11 = sphi %s3315_s11, %s19_s11   ;;  %s3254_s10 = sphi %s3313_s10, %s4558_s10   ;;  %s3250_s30 = sphi %s3311_s30, %s4557_s30  }
   0x3   : > { %p33_p1 = scmp.ge.s32.totalorder %s31_s12, 2  ;;  %p308_p2 = scmp.lt.s32.totalorder %s3258_s11, 3 }
   0x5   : > { %s4560_s12 = smov (%p33_p1, %s31_s12), 0  ;;  %p309_p3 = pnand %p2593_p0, %p308_p2 }
   0x7   : > { %312 = sbr.rel (%p309_p3) target bundleno = 1101 (0x44d), region = 56 }
   0xc   : > { %p353_p4 = scmp.lt.s32.totalorder %s3250_s30, 1  ;;  %v499_v0 = vld [vmem:[%s4441_s2 + $0x70] sm:$0xff]  ;;  %v3260_v1 = vmov 0   ;;  %v500_v2 = vld [vmem:[%s4441_s2 + $0x78] sm:$0xff]  ;;  %v493_v32 = vld [vmem:[%s4441_s2 + $0x40] sm:$0xff]  ;;  %vm2237_vm0 = vcmask 523264  }
   0xd   : > { %3233 = vset.pattern.permute.xlu0 %v3260_v1  ;;  %3234 = vset.pattern.permute.xlu1 %v3260_v1  ;;  %vm2401_vm1 = vcmask 261120   ;;  %vm2486_vm2 = vcmask 1042432   ;;  %vm2487_vm3 = vsmask.f32 2304  ;;  %vm2489_vm4 = vcmask 1046532  }
   0xe   : > { %s4562_s30 = smov (!%p353_p4, %s3250_s30), 1  ;;  %573 = vperm.xlu0 %3233, %v499_v0   ;;  %3235 = vset.pattern.permute.xlu2 %v3260_v1  ;;  %vm2490_vm5 = vsmask.f32 6400  ;;  %vm2488_vm6 = vmand %vm2486_vm2, %vm2487_vm3 }
   0xf   : > { %s3206_s15 = smul.u32 768, %s4562_s30  ;;  %vm2491_vm7 = vmand %vm2489_vm4, %vm2490_vm5 }
  0x10   : > { %s3207_s22 = smul.u32 24, %s4562_s30  ;;  %vm4402_vm8 = vmor %vm2491_vm7, %vm2488_vm6 }
  0x11   : > { %s3338_s18 = scalar_lea.vmem %s4439_s0, %s3206_s15 }
  0x12   : > { %v2830_v3 = vld [vmem:[%s3338_s18 + $0x150] sm:$0xf]  ;;  %v3133_v4 = vld [vmem:[%s3338_s18 + $0x164] sm:$0xf0]  ;;  %v3130_v8 = vld [vmem:[%s3338_s18 + $0x154] sm:$0xf]  ;;  %s4400_s25 = scalar_lea.vmem %s4448_s9, %s3207_s22 }
  0x13   : > { %v3022_v5 = vld [vmem:[%s3338_s18 + $0x2d0] sm:$0xf]  ;;  %v2831_v6 = vor.u32 %v3133_v4, %v2830_v3  ;;  %v3181_v7 = vld [vmem:[%s3338_s18 + $0x2e4] sm:$0xf0]  ;;  %v2832_v9 = vld [vmem:[%s3338_s18 + $0x168] sm:$0xf0] }
  0x14   : > { %v3023_v10 = vor.u32 %v3181_v7, %v3022_v5  ;;  %v2835_v11 = vor.u32 %v3130_v8, %v2832_v9  ;;  %v3178_v12 = vld [vmem:[%s3338_s18 + $0x2d4] sm:$0xf]  ;;  %v3024_v13 = vld [vmem:[%s3338_s18 + $0x2e8] sm:$0xf0]  ;;  %v2806_v14 = vld [vmem:[%s3338_s18 + $0x120] sm:$0xf] }
  0x15   : > { %1141 = vmatpush.bf16.msra.mxu0 %v2831_v6  ;;  %v3027_v15 = vor.u32 %v3178_v12, %v3024_v13  ;;  %v3127_v16 = vld [vmem:[%s3338_s18 + $0x134] sm:$0xf0]  ;;  %v2998_v17 = vld [vmem:[%s3338_s18 + $0x2a0] sm:$0xf]  ;;  %v3124_v21 = vld [vmem:[%s3338_s18 + $0x124] sm:$0xf] }
  0x16   : > { %v3175_v18 = vld [vmem:[%s3338_s18 + $0x2b4] sm:$0xf0]  ;;  %578 = vperm.xlu0 %3233, %v500_v2   ;;  %1190 = vmatpush.bf16.msra.mxu1 %v3023_v10  ;;  %v2807_v19 = vor.u32 %v3127_v16, %v2806_v14  ;;  %v2808_v22 = vld [vmem:[%s3338_s18 + $0x138] sm:$0xf0]  ;;  %v3172_v23 = vld [vmem:[%s3338_s18 + $0x2a4] sm:$0xf] }
  0x17   : > { %1239 = vmatpush.bf16.msra.mxu2 %v2835_v11  ;;  %v2999_v20 = vor.u32 %v3175_v18, %v2998_v17  ;;  %1288 = vmatpush.bf16.msra.mxu3 %v3027_v15  ;;  %v2811_v24 = vor.u32 %v3124_v21, %v2808_v22  ;;  %v3000_v25 = vld [vmem:[%s3338_s18 + $0x2b8] sm:$0xf0]  ;;  %v2782_v26 = vld [vmem:[%s3338_s18 + $0xf0] sm:$0xf]  ;;  %v3121_v27 = vld [vmem:[%s3338_s18 + $0x104] sm:$0xf0] }
  0x18   : > { %v3003_v28 = vor.u32 %v3172_v23, %v3000_v25  ;;  %v2974_v29 = vld [vmem:[%s3338_s18 + $0x270] sm:$0xf]  ;;  %v3169_v30 = vld [vmem:[%s3338_s18 + $0x284] sm:$0xf0]  ;;  %v3118_v31 = vld [vmem:[%s3338_s18 + $0xf4] sm:$0xf]  ;;  %v2783_v33 = vor.u32 %v3121_v27, %v2782_v26 }
  0x19   : > { %1142 = vmatpush.bf16.msra.mxu0 %v2807_v19  ;;  %v2784_v34 = vld [vmem:[%s3338_s18 + $0x108] sm:$0xf0]  ;;  %v3166_v35 = vld [vmem:[%s3338_s18 + $0x274] sm:$0xf]  ;;  %v2975_v37 = vor.u32 %v3169_v30, %v2974_v29  ;;  %v2758_v39 = vld [vmem:[%s3338_s18 + $0xc0] sm:$0xf] }
  0x1a   : > { %v2976_v36 = vld [vmem:[%s3338_s18 + $0x288] sm:$0xf0]  ;;  %1191 = vmatpush.bf16.msra.mxu1 %v2999_v20  ;;  %v2787_v38 = vor.u32 %v3118_v31, %v2784_v34  ;;  %v3115_v40 = vld [vmem:[%s3338_s18 + $0xd4] sm:$0xf0]  ;;  %v2950_v41 = vld [vmem:[%s3338_s18 + $0x240] sm:$0xf] }
  0x1b   : > { %1240 = vmatpush.bf16.msra.mxu2 %v2811_v24  ;;  %1289 = vmatpush.bf16.msra.mxu3 %v3003_v28  ;;  %v2979_v42 = vor.u32 %v3166_v35, %v2976_v36  ;;  %v3163_v43 = vld [vmem:[%s3338_s18 + $0x254] sm:$0xf0]  ;;  %v3112_v44 = vld [vmem:[%s3338_s18 + $0xc4] sm:$0xf]  ;;  %v2760_v45 = vld [vmem:[%s3338_s18 + $0xd8] sm:$0xf0]  ;;  %v2759_v48 = vor.u32 %v3115_v40, %v2758_v39 }
  0x1c   : > { %v3160_v46 = vld [vmem:[%s3338_s18 + $0x244] sm:$0xf]  ;;  %v2952_v47 = vld [vmem:[%s3338_s18 + $0x258] sm:$0xf0]  ;;  %v2951_v49 = vor.u32 %v3163_v43, %v2950_v41  ;;  %v2763_v50 = vor.u32 %v3112_v44, %v2760_v45  ;;  %v2734_v51 = vld [vmem:[%s3338_s18 + $0x90] sm:$0xf] }
  0x1d   : > { %1143 = vmatpush.bf16.msra.mxu0 %v2783_v33  ;;  %v3109_v52 = vld [vmem:[%s3338_s18 + $0xa4] sm:$0xf0]  ;;  %v2926_v53 = vld [vmem:[%s3338_s18 + $0x210] sm:$0xf]  ;;  %v2955_v54 = vor.u32 %v3160_v46, %v2952_v47  ;;  %v3106_v56 = vld [vmem:[%s3338_s18 + $0x94] sm:$0xf] }
  0x1e   : > { %543 = vperm.xlu0 %3233, %v493_v32   ;;  %1192 = vmatpush.bf16.msra.mxu1 %v2975_v37  ;;  %v3157_v55 = vld [vmem:[%s3338_s18 + $0x224] sm:$0xf0]  ;;  %v2736_v57 = vld [vmem:[%s3338_s18 + $0xa8] sm:$0xf0]  ;;  %v3154_v58 = vld [vmem:[%s3338_s18 + $0x214] sm:$0xf]  ;;  %v2735_v60 = vor.u32 %v3109_v52, %v2734_v51 }
  0x1f   : > { %1241 = vmatpush.bf16.msra.mxu2 %v2787_v38  ;;  %1290 = vmatpush.bf16.msra.mxu3 %v2979_v42  ;;  %v2928_v59 = vld [vmem:[%s3338_s18 + $0x228] sm:$0xf0]  ;;  %v2927_v61 = vor.u32 %v3157_v55, %v2926_v53  ;;  %v2739_v62 = vor.u32 %v3106_v56, %v2736_v57  ;;  %v2710_v63 = vld [vmem:[%s3338_s18 + $0x60] sm:$0xf]  ;;  %v3103_v0 = vld [vmem:[%s3338_s18 + $0x74] sm:$0xf0] }
  0x20   : > { %v2902_v1 = vld [vmem:[%s3338_s18 + $0x1e0] sm:$0xf]  ;;  %v2931_v2 = vor.u32 %v3154_v58, %v2928_v59  ;;  %v3151_v3 = vld [vmem:[%s3338_s18 + $0x1f4] sm:$0xf0]  ;;  %v3100_v4 = vld [vmem:[%s3338_s18 + $0x64] sm:$0xf]  ;;  %v2711_v8 = vor.u32 %v3103_v0, %v2710_v63 }
  0x21   : > { %1144 = vmatpush.bf16.msra.mxu0 %v2759_v48  ;;  %v2712_v5 = vld [vmem:[%s3338_s18 + $0x78] sm:$0xf0]  ;;  %v3148_v6 = vld [vmem:[%s3338_s18 + $0x1e4] sm:$0xf]  ;;  %v2903_v9 = vor.u32 %v3151_v3, %v2902_v1  ;;  %v2686_v11 = vld [vmem:[%s3338_s18 + $0x30] sm:$0xf] }
  0x22   : > { %1193 = vmatpush.bf16.msra.mxu1 %v2951_v49  ;;  %v2904_v7 = vld [vmem:[%s3338_s18 + $0x1f8] sm:$0xf0]  ;;  %v2715_v10 = vor.u32 %v3100_v4, %v2712_v5  ;;  %v3097_v12 = vld [vmem:[%s3338_s18 + $0x44] sm:$0xf0]  ;;  %v2878_v13 = vld [vmem:[%s3338_s18 + $0x1b0] sm:$0xf] }
  0x23   : > { %1242 = vmatpush.bf16.msra.mxu2 %v2763_v50  ;;  %1291 = vmatpush.bf16.msra.mxu3 %v2955_v54  ;;  %v2907_v14 = vor.u32 %v3148_v6, %v2904_v7  ;;  %v3145_v15 = vld [vmem:[%s3338_s18 + $0x1c4] sm:$0xf0]  ;;  %v3094_v16 = vld [vmem:[%s3338_s18 + $0x34] sm:$0xf]  ;;  %v2688_v17 = vld [vmem:[%s3338_s18 + $0x48] sm:$0xf0]  ;;  %v2687_v21 = vor.u32 %v3097_v12, %v2686_v11 }
  0x24   : > { %v3142_v18 = vld [vmem:[%s3338_s18 + $0x1b4] sm:$0xf]  ;;  %v2880_v19 = vld [vmem:[%s3338_s18 + $0x1c8] sm:$0xf0]  ;;  %v497_v20 = vld [vmem:[%s4441_s2 + $0x60] sm:$0xff]  ;;  %v2879_v24 = vor.u32 %v3145_v15, %v2878_v13  ;;  %v2691_v25 = vor.u32 %v3094_v16, %v2688_v17 }
  0x25   : > { %1145 = vmatpush.bf16.msra.mxu0 %v2735_v60  ;;  %563 = vperm.xlu1 %3234, %v497_v20   ;;  %v492_v22 = vld [vmem:[%s4441_s2 + $0x38] sm:$0xff]  ;;  %v495_v23 = vld [vmem:[%s4441_s2 + $0x50] sm:$0xff]  ;;  %v2662_v26 = vld [vmem:[%s3338_s18] sm:$0xf]  ;;  %v2883_v29 = vor.u32 %v3142_v18, %v2880_v19 }
  0x26   : > { %1194 = vmatpush.bf16.msra.mxu1 %v2927_v61  ;;  %v3091_v27 = vld [vmem:[%s3338_s18 + $0x14] sm:$0xf0]  ;;  %v2854_v28 = vld [vmem:[%s3338_s18 + $0x180] sm:$0xf]  ;;  %v3088_v31 = vld [vmem:[%s3338_s18 + $0x4] sm:$0xf]  ;;  %538 = vperm.xlu0 %3233, %v492_v22  }
  0x27   : > { %1243 = vmatpush.bf16.msra.mxu2 %v2739_v62  ;;  %1292 = vmatpush.bf16.msra.mxu3 %v2931_v2  ;;  %v3139_v30 = vld [vmem:[%s3338_s18 + $0x194] sm:$0xf0]  ;;  %v2664_v32 = vld [vmem:[%s3338_s18 + $0x18] sm:$0xf0]  ;;  %v3136_v33 = vld [vmem:[%s3338_s18 + $0x184] sm:$0xf]  ;;  %v2663_v35 = vor.u32 %v3091_v27, %v2662_v26 }
  0x28   : > { %v2856_v34 = vld [vmem:[%s3338_s18 + $0x198] sm:$0xf0]  ;;  %553 = vperm.xlu2 %3235, %v495_v23   ;;  %v2598_v36 = vld [vmem:[%s4440_s1] sm:$0xf]  ;;  %v3185_v37 = vld [vmem:[%s4440_s1 + $0x4] sm:$0xf0]  ;;  %v2855_v38 = vor.u32 %v3139_v30, %v2854_v28  ;;  %v2667_v39 = vor.u32 %v3088_v31, %v2664_v32 }
  0x29   : > { %1146 = vmatpush.bf16.msra.mxu0 %v2711_v8  ;;  %v3184_v40 = vld [vmem:[%s4440_s1 + $0x4] sm:$0xf]  ;;  %v2600_v41 = vld [vmem:[%s4440_s1 + $0x8] sm:$0xf0]  ;;  %v2859_v43 = vor.u32 %v3136_v33, %v2856_v34  ;;  %v3434_v44 = vor.u32 %v3185_v37, %v2598_v36  ;;  %v487_v45 = vld [vmem:[%s4441_s2 + $0x10] sm:$0xff] }
  0x2a   : > { %1195 = vmatpush.bf16.msra.mxu1 %v2903_v9  ;;  %v498_v42 = vld [vmem:[%s4441_s2 + $0x68] sm:$0xff]  ;;  %v3439_v46 = vor.u32 %v3184_v40, %v2600_v41  ;;  %v496_v47 = vld [vmem:[%s4441_s2 + $0x58] sm:$0xff]  ;;  %v491_v50 = vld [vmem:[%s4441_s2 + $0x30] sm:$0xff] }
  0x2b   : > { %1244 = vmatpush.bf16.msra.mxu2 %v2715_v10  ;;  %1293 = vmatpush.bf16.msra.mxu3 %v2907_v14  ;;  %v494_v48 = vld [vmem:[%s4441_s2 + $0x48] sm:$0xff]  ;;  %v2606_v51 = vld [vmem:[%s4440_s1 + $0x10] sm:$0xf]  ;;  %v3187_v52 = vld [vmem:[%s4440_s1 + $0x14] sm:$0xf0] }
  0x2c   : > { %v486_v49 = vld [vmem:[%s4441_s2 + $0x8] sm:$0xff]  ;;  %v3186_v53 = vld [vmem:[%s4440_s1 + $0x14] sm:$0xf]  ;;  %v2608_v54 = vld [vmem:[%s4440_s1 + $0x18] sm:$0xf0]  ;;  %v3472_v56 = vor.u32 %v3187_v52, %v2606_v51 }
  0x2d   : > { %1147 = vmatpush.bf16.msra.mxu0 %v2687_v21  ;;  %568 = vperm.xlu1 %3234, %v498_v42   ;;  %v489_v55 = vld [vmem:[%s4441_s2 + $0x20] sm:$0xff]  ;;  %v3474_v57 = vor.u32 %v3186_v53, %v2608_v54  ;;  %v490_v58 = vld [vmem:[%s4441_s2 + $0x28] sm:$0xff]  ;;  %v488_v59 = vld [vmem:[%s4441_s2 + $0x18] sm:$0xff] }
  0x2e   : > { %1196 = vmatpush.bf16.msra.mxu1 %v2879_v24  ;;  %513 = vperm.xlu0 %3233, %v487_v45   ;;  %v3131_v60 = vld [vmem:[%s3338_s18 + $0x15c] sm:$0xf]  ;;  %v2840_v61 = vld [vmem:[%s3338_s18 + $0x170] sm:$0xf0]  ;;  %v2838_v1 = vld [vmem:[%s3338_s18 + $0x158] sm:$0xf] }
  0x2f   : > { %1245 = vmatpush.bf16.msra.mxu2 %v2691_v25  ;;  %1294 = vmatpush.bf16.msra.mxu3 %v2883_v29  ;;  %v3179_v62 = vld [vmem:[%s3338_s18 + $0x2dc] sm:$0xf]  ;;  %v2843_v63 = vor.u32 %v3131_v60, %v2840_v61  ;;  %v3032_v0 = vld [vmem:[%s3338_s18 + $0x2f0] sm:$0xf0]  ;;  %v3134_v2 = vld [vmem:[%s3338_s18 + $0x16c] sm:$0xf0] }
  0x30   : > { %558 = vperm.xlu2 %3235, %v496_v47   ;;  %v3035_v3 = vor.u32 %v3179_v62, %v3032_v0  ;;  %v2839_v4 = vor.u32 %v3134_v2, %v2838_v1  ;;  %v3030_v5 = vld [vmem:[%s3338_s18 + $0x2d8] sm:$0xf]  ;;  %v3182_v6 = vld [vmem:[%s3338_s18 + $0x2ec] sm:$0xf0]  ;;  %v485_v7 = vld [vmem:[%s4441_s2] sm:$0xff] }
  0x31   : > { %1148 = vmatpush.bf16.msra.mxu0 %v2663_v35  ;;  %v3031_v8 = vor.u32 %v3182_v6, %v3030_v5  ;;  %v2614_v9 = vld [vmem:[%s4440_s1 + $0x20] sm:$0xf]  ;;  %v3189_v10 = vld [vmem:[%s4440_s1 + $0x24] sm:$0xf0]  ;;  %v3188_v11 = vld [vmem:[%s4440_s1 + $0x24] sm:$0xf] }
  0x32   : > { %1197 = vmatpush.bf16.msra.mxu1 %v2855_v38  ;;  %v2616_v12 = vld [vmem:[%s4440_s1 + $0x28] sm:$0xf0]  ;;  %v3509_v13 = vor.u32 %v3189_v10, %v2614_v9  ;;  %v2816_v16 = vld [vmem:[%s3338_s18 + $0x140] sm:$0xf0]  ;;  %v2814_v20 = vld [vmem:[%s3338_s18 + $0x128] sm:$0xf] }
  0x33   : > { %1246 = vmatpush.bf16.msra.mxu2 %v2667_v39  ;;  %1295 = vmatpush.bf16.msra.mxu3 %v2859_v43  ;;  %v3511_v14 = vor.u32 %v3188_v11, %v2616_v12  ;;  %v3125_v15 = vld [vmem:[%s3338_s18 + $0x12c] sm:$0xf]  ;;  %v3008_v19 = vld [vmem:[%s3338_s18 + $0x2c0] sm:$0xf0]  ;;  %v3128_v21 = vld [vmem:[%s3338_s18 + $0x13c] sm:$0xf0] }
  0x34   : > { %1149 = vmatmul.bf16.vlgmr.msra.gmra.mxu0 %v3434_v44  ;;  %v3173_v17 = vld [vmem:[%s3338_s18 + $0x2ac] sm:$0xf]  ;;  %v2819_v18 = vor.u32 %v3125_v15, %v2816_v16  ;;  %v2815_v23 = vor.u32 %v3128_v21, %v2814_v20  ;;  %v3006_v24 = vld [vmem:[%s3338_s18 + $0x2a8] sm:$0xf]  ;;  %v3176_v25 = vld [vmem:[%s3338_s18 + $0x2bc] sm:$0xf0] }
  0x35   : > { %1198 = vmatmul.bf16.vlgmr.msra.gmra.mxu1 %v3439_v46  ;;  %548 = vperm.xlu1 %3234, %v494_v48   ;;  %4489 = vst [vmem:[#allocation2_spill] sm:$0xff] %v3511_v14  ;;  %v3011_v22 = vor.u32 %v3173_v17, %v3008_v19  ;;  %v3007_v26 = vor.u32 %v3176_v25, %v3006_v24  ;;  %v2622_v27 = vld [vmem:[%s4440_s1 + $0x30] sm:$0xf]  ;;  %v3191_v28 = vld [vmem:[%s4440_s1 + $0x34] sm:$0xf0] }
  0x36   : > { %1247 = vmatmul.bf16.vlgmr.msra.gmra.mxu2 %v3434_v44  ;;  %1296 = vmatmul.bf16.vlgmr.msra.gmra.mxu3 %v3439_v46  ;;  %v3190_v29 = vld [vmem:[%s4440_s1 + $0x34] sm:$0xf]  ;;  %v2624_v30 = vld [vmem:[%s4440_s1 + $0x38] sm:$0xf0]  ;;  %v3537_v31 = vor.u32 %v3191_v28, %v2622_v27  ;;  %v2790_v38 = vld [vmem:[%s3338_s18 + $0xf8] sm:$0xf] }
  0x37   : > { %508 = vperm.xlu0 %3233, %v486_v49   ;;  %1435 = vmatpush.bf16.msrb.mxu2 %v2843_v63  ;;  %v3539_v32 = vor.u32 %v3190_v29, %v2624_v30  ;;  %v3119_v33 = vld [vmem:[%s3338_s18 + $0xfc] sm:$0xf]  ;;  %v2792_v34 = vld [vmem:[%s3338_s18 + $0x110] sm:$0xf0]  ;;  %v3122_v39 = vld [vmem:[%s3338_s18 + $0x10c] sm:$0xf0] }
  0x38   : > { %533 = vperm.xlu2 %3235, %v491_v50   ;;  %1484 = vmatpush.bf16.msrb.mxu3 %v3035_v3  ;;  %4490 = vst [vmem:[#allocation3_spill] sm:$0xff] %v3537_v31  ;;  %v3167_v35 = vld [vmem:[%s3338_s18 + $0x27c] sm:$0xf]  ;;  %v2795_v36 = vor.u32 %v3119_v33, %v2792_v34  ;;  %v2984_v37 = vld [vmem:[%s3338_s18 + $0x290] sm:$0xf0]  ;;  %v2791_v41 = vor.u32 %v3122_v39, %v2790_v38 }
  0x39   : > { %1337 = vmatpush.bf16.msrb.mxu0 %v2839_v4  ;;  %1386 = vmatpush.bf16.msrb.mxu1 %v3031_v8  ;;  %4491 = vst [vmem:[#allocation4_spill] sm:$0xff] %v3539_v32  ;;  %v2987_v40 = vor.u32 %v3167_v35, %v2984_v37  ;;  %v2982_v42 = vld [vmem:[%s3338_s18 + $0x278] sm:$0xf]  ;;  %v3170_v43 = vld [vmem:[%s3338_s18 + $0x28c] sm:$0xf0] }
  0x3a   : > { %v2983_v45 = vor.u32 %v3170_v43, %v2982_v42  ;;  %v2630_v47 = vld [vmem:[%s4440_s1 + $0x40] sm:$0xf]  ;;  %v3193_v48 = vld [vmem:[%s4440_s1 + $0x44] sm:$0xf0]  ;;  %v3192_v49 = vld [vmem:[%s4440_s1 + $0x44] sm:$0xf] }
  0x3b   : > { %1436 = vmatpush.bf16.msrb.mxu2 %v2819_v18  ;;  %v2632_v50 = vld [vmem:[%s4440_s1 + $0x48] sm:$0xf0]  ;;  %v3565_v51 = vor.u32 %v3193_v48, %v2630_v47  ;;  %v2768_v54 = vld [vmem:[%s3338_s18 + $0xe0] sm:$0xf0]  ;;  %v2766_v60 = vld [vmem:[%s3338_s18 + $0xc8] sm:$0xf] }
  0x3c   : > { %1485 = vmatpush.bf16.msrb.mxu3 %v3011_v22  ;;  %v3567_v52 = vor.u32 %v3192_v49, %v2632_v50  ;;  %v3113_v53 = vld [vmem:[%s3338_s18 + $0xcc] sm:$0xf]  ;;  %v3116_v61 = vld [vmem:[%s3338_s18 + $0xdc] sm:$0xf0]  ;;  %v2958_v0 = vld [vmem:[%s3338_s18 + $0x248] sm:$0xf] }
  0x3d   : > { %523 = vperm.xlu1 %3234, %v489_v55   ;;  %1338 = vmatpush.bf16.msrb.mxu0 %v2815_v23  ;;  %4492 = vst [vmem:[#allocation5_spill] sm:$0xff] %v3565_v51  ;;  %v3161_v55 = vld [vmem:[%s3338_s18 + $0x24c] sm:$0xf]  ;;  %v2767_v63 = vor.u32 %v3116_v61, %v2766_v60  ;;  %v3164_v1 = vld [vmem:[%s3338_s18 + $0x25c] sm:$0xf0] }
  0x3e   : > { %1387 = vmatpush.bf16.msrb.mxu1 %v3007_v26  ;;  %4493 = vst [vmem:[#allocation6_spill] sm:$0xff] %v3567_v52  ;;  %v2959_v2 = vor.u32 %v3164_v1, %v2958_v0  ;;  %v2638_v3 = vld [vmem:[%s4440_s1 + $0x50] sm:$0xf]  ;;  %v3195_v4 = vld [vmem:[%s4440_s1 + $0x54] sm:$0xf0] }
  0x3f   : > { %1437 = vmatpush.bf16.msrb.mxu2 %v2795_v36  ;;  %v3194_v5 = vld [vmem:[%s4440_s1 + $0x54] sm:$0xf]  ;;  %v2640_v6 = vld [vmem:[%s4440_s1 + $0x58] sm:$0xf0]  ;;  %v2742_v9 = vld [vmem:[%s3338_s18 + $0x98] sm:$0xf] }
  0x40   : > { %528 = vperm.xlu2 %3235, %v490_v58   ;;  %1486 = vmatpush.bf16.msrb.mxu3 %v2987_v40  ;;  %v2771_v58 = vor.u32 %v3113_v53, %v2768_v54  ;;  %v3595_v8 = vor.u32 %v3194_v5, %v2640_v6  ;;  %v3110_v10 = vld [vmem:[%s3338_s18 + $0xac] sm:$0xf0]  ;;  %v2934_v11 = vld [vmem:[%s3338_s18 + $0x218] sm:$0xf]  ;;  %v3107_v17 = vld [vmem:[%s3338_s18 + $0x9c] sm:$0xf] }
  0x41   : > { %1339 = vmatpush.bf16.msrb.mxu0 %v2791_v41  ;;  %v2743_v15 = vor.u32 %v3110_v10, %v2742_v9  ;;  %v3158_v16 = vld [vmem:[%s3338_s18 + $0x22c] sm:$0xf0]  ;;  %v2744_v18 = vld [vmem:[%s3338_s18 + $0xb0] sm:$0xf0]  ;;  %v3155_v21 = vld [vmem:[%s3338_s18 + $0x21c] sm:$0xf] }
  0x42   : > { %1388 = vmatpush.bf16.msrb.mxu1 %v2983_v45  ;;  %4495 = vst [vmem:[#allocation8_spill] sm:$0xff] %v3595_v8  ;;  %v2935_v19 = vor.u32 %v3158_v16, %v2934_v11  ;;  %v2747_v20 = vor.u32 %v3107_v17, %v2744_v18  ;;  %v2936_v22 = vld [vmem:[%s3338_s18 + $0x230] sm:$0xf0]  ;;  %v2718_v23 = vld [vmem:[%s3338_s18 + $0x68] sm:$0xf] }
  0x43   : > { %1438 = vmatpush.bf16.msrb.mxu2 %v2771_v58  ;;  %v2939_v25 = vor.u32 %v3155_v21, %v2936_v22  ;;  %v3104_v26 = vld [vmem:[%s3338_s18 + $0x7c] sm:$0xf0]  ;;  %v2910_v27 = vld [vmem:[%s3338_s18 + $0x1e8] sm:$0xf]  ;;  %v3101_v33 = vld [vmem:[%s3338_s18 + $0x6c] sm:$0xf] }
  0x44   : > { %1154 = vmatmul.bf16.gmra.mxu0 %v3472_v56  ;;  %v3152_v28 = vld [vmem:[%s3338_s18 + $0x1fc] sm:$0xf0]  ;;  %v2719_v29 = vor.u32 %v3104_v26, %v2718_v23  ;;  %v2720_v34 = vld [vmem:[%s3338_s18 + $0x80] sm:$0xf0]  ;;  %v3149_v35 = vld [vmem:[%s3338_s18 + $0x1ec] sm:$0xf] }
  0x45   : > { %1203 = vmatmul.bf16.gmra.mxu1 %v3474_v57  ;;  %518 = vperm.xlu1 %3234, %v488_v59   ;;  %v2960_v59 = vld [vmem:[%s3338_s18 + $0x260] sm:$0xf0]  ;;  %v2911_v30 = vor.u32 %v3152_v28, %v2910_v27  ;;  %v2723_v36 = vor.u32 %v3101_v33, %v2720_v34  ;;  %v2694_v38 = vld [vmem:[%s3338_s18 + $0x38] sm:$0xf]  ;;  %v3098_v39 = vld [vmem:[%s3338_s18 + $0x4c] sm:$0xf0] }
  0x46   : > { %1252 = vmatmul.bf16.gmra.mxu2 %v3472_v56  ;;  %1301 = vmatmul.bf16.gmra.mxu3 %v3474_v57  ;;  %v2963_v62 = vor.u32 %v3161_v55, %v2960_v59  ;;  %v2912_v37 = vld [vmem:[%s3338_s18 + $0x200] sm:$0xf0]  ;;  %v2886_v41 = vld [vmem:[%s3338_s18 + $0x1b8] sm:$0xf]  ;;  %v3146_v42 = vld [vmem:[%s3338_s18 + $0x1cc] sm:$0xf0]  ;;  %v2695_v45 = vor.u32 %v3098_v39, %v2694_v38 }
  0x47   : > { %1340 = vmatpush.bf16.msrb.mxu0 %v2767_v63  ;;  %1389 = vmatpush.bf16.msrb.mxu1 %v2959_v2  ;;  %v2915_v40 = vor.u32 %v3149_v35, %v2912_v37  ;;  %v3095_v43 = vld [vmem:[%s3338_s18 + $0x3c] sm:$0xf]  ;;  %v2696_v47 = vld [vmem:[%s3338_s18 + $0x50] sm:$0xf0]  ;;  %v2887_v50 = vor.u32 %v3146_v42, %v2886_v41  ;;  %v2646_v54 = vld [vmem:[%s4440_s1 + $0x60] sm:$0xf] }
  0x48   : > { %503 = vperm.xlu2 %3235, %v485_v7   ;;  %1487 = vmatpush.bf16.msrb.mxu3 %v2963_v62  ;;  %v3593_v7 = vor.u32 %v3195_v4, %v2638_v3  ;;  %v3143_v48 = vld [vmem:[%s3338_s18 + $0x1bc] sm:$0xf]  ;;  %v2888_v49 = vld [vmem:[%s3338_s18 + $0x1d0] sm:$0xf0]  ;;  %v2699_v53 = vor.u32 %v3095_v43, %v2696_v47  ;;  %v3197_v55 = vld [vmem:[%s4440_s1 + $0x64] sm:$0xf0] }
  0x49   : > { %1439 = vmatpush.bf16.msrb.mxu2 %v2747_v20  ;;  %v2891_v58 = vor.u32 %v3143_v48, %v2888_v49  ;;  %v3196_v59 = vld [vmem:[%s4440_s1 + $0x64] sm:$0xf]  ;;  %v2648_v60 = vld [vmem:[%s4440_s1 + $0x68] sm:$0xf0]  ;;  %v3643_v62 = vor.u32 %v3197_v55, %v2646_v54  ;;  %v2670_v63 = vld [vmem:[%s3338_s18 + $0x8] sm:$0xf] }
  0x4a   : > { %4494 = vst [vmem:[#allocation7_spill] sm:$0xff] %v3593_v7  ;;  %v3092_v0 = vld [vmem:[%s3338_s18 + $0x1c] sm:$0xf0]  ;;  %v2862_v1 = vld [vmem:[%s3338_s18 + $0x188] sm:$0xf]  ;;  %v3648_v2 = vor.u32 %v3196_v59, %v2648_v60 }
  0x4b   : > { %1341 = vmatpush.bf16.msrb.mxu0 %v2743_v15  ;;  %1390 = vmatpush.bf16.msrb.mxu1 %v2935_v19  ;;  %4496 = vst [vmem:[#allocation9_spill] sm:$0xff] %v3643_v62  ;;  %v2671_v4 = vor.u32 %v3092_v0, %v2670_v63  ;;  %v3140_v5 = vld [vmem:[%s3338_s18 + $0x19c] sm:$0xf0]  ;;  %v3089_v6 = vld [vmem:[%s3338_s18 + $0xc] sm:$0xf] }
  0x4c   : > { %1488 = vmatpush.bf16.msrb.mxu3 %v2939_v25  ;;  %4497 = vst [vmem:[#allocation10_spill] sm:$0xff] %v3648_v2  ;;  %v2672_v9 = vld [vmem:[%s3338_s18 + $0x20] sm:$0xf0]  ;;  %v2863_v10 = vor.u32 %v3140_v5, %v2862_v1  ;;  %v3137_v15 = vld [vmem:[%s3338_s18 + $0x18c] sm:$0xf] }
  0x4d   : > { %1440 = vmatpush.bf16.msrb.mxu2 %v2723_v36  ;;  %v2675_v11 = vor.u32 %v3089_v6, %v2672_v9  ;;  %v2864_v16 = vld [vmem:[%s3338_s18 + $0x1a0] sm:$0xf0]  ;;  %v2654_v20 = vld [vmem:[%s4440_s1 + $0x70] sm:$0xf]  ;;  %v3199_v21 = vld [vmem:[%s4440_s1 + $0x74] sm:$0xf0] }
  0x4e   : > { %v2867_v17 = vor.u32 %v3137_v15, %v2864_v16  ;;  %v3198_v22 = vld [vmem:[%s4440_s1 + $0x74] sm:$0xf]  ;;  %v2656_v23 = vld [vmem:[%s4440_s1 + $0x78] sm:$0xf0]  ;;  %v3679_v26 = vor.u32 %v3199_v21, %v2654_v20 }
  0x4f   : > { %1342 = vmatpush.bf16.msrb.mxu0 %v2719_v29  ;;  %1391 = vmatpush.bf16.msrb.mxu1 %v2911_v30  ;;  %v3681_v27 = vor.u32 %v3198_v22, %v2656_v23  ;;  %v2848_v15 = vld [vmem:[%s3338_s18 + $0x178] sm:$0xf0] }
  0x50   : > { %1489 = vmatpush.bf16.msrb.mxu3 %v2915_v40  ;;  %4500 = vst [vmem:[#allocation13_spill] sm:$0xff] %v3679_v26 }
  0x51   : > { %1441 = vmatpush.bf16.msrb.mxu2 %v2699_v53  ;;  %4501 = vst [vmem:[#allocation14_spill] sm:$0xff] %v3681_v27 }
  0x53   : > { %1343 = vmatpush.bf16.msrb.mxu0 %v2695_v45  ;;  %1392 = vmatpush.bf16.msrb.mxu1 %v2887_v50 }
  0x54   : > { %1159 = vmatmul.bf16.gmra.mxu0 %v3509_v13  ;;  %1490 = vmatpush.bf16.msrb.mxu3 %v2891_v58 }
  0x55   : > { %1208 = vmatmul.bf16.gmra.mxu1 %v3511_v14  ;;  %1442 = vmatpush.bf16.msrb.mxu2 %v2675_v11  ;;  %v3132_v11 = vld [vmem:[%s3338_s18 + $0x164] sm:$0xf] }
  0x56   : > { %1257 = vmatmul.bf16.gmra.mxu2 %v3509_v13  ;;  %1306 = vmatmul.bf16.gmra.mxu3 %v3511_v14 }
  0x57   : > { %1344 = vmatpush.bf16.msrb.mxu0 %v2671_v4  ;;  %1393 = vmatpush.bf16.msrb.mxu1 %v2863_v10 }
  0x58   : > { %1491 = vmatpush.bf16.msrb.mxu3 %v2867_v17  ;;  %v2851_v17 = vor.u32 %v3132_v11, %v2848_v15 }
  0x5a   : > { %1631 = vmatpush.bf16.msra.mxu2 %v2851_v17 }
  0x64   : > { %1164 = vmatmul.bf16.gmra.mxu0 %v3537_v31 }
  0x65   : > { %1213 = vmatmul.bf16.gmra.mxu1 %v3539_v32 }
  0x66   : > { %1262 = vmatmul.bf16.gmra.mxu2 %v3537_v31  ;;  %1311 = vmatmul.bf16.gmra.mxu3 %v3539_v32 }
  0x74   : > { %1169 = vmatmul.bf16.gmra.mxu0 %v3565_v51 }
  0x75   : > { %1218 = vmatmul.bf16.gmra.mxu1 %v3567_v52 }
  0x76   : > { %1267 = vmatmul.bf16.gmra.mxu2 %v3565_v51  ;;  %1316 = vmatmul.bf16.gmra.mxu3 %v3567_v52 }
  0x80   : > { %v3603_v12 = vpop.permute.xlu0 %573 }
  0x82   : > { %v3612_v24 = vpop.permute.xlu2 %553 }
  0x84   : > { %1174 = vmatmul.bf16.gmra.mxu0 %v3593_v7 }
  0x85   : > { %1223 = vmatmul.bf16.gmra.mxu1 %v3595_v8 }
  0x86   : > { %1272 = vmatmul.bf16.gmra.mxu2 %v3593_v7  ;;  %1321 = vmatmul.bf16.gmra.mxu3 %v3595_v8 }
  0x88   : > { %v3641_v61 = vpop.permute.xlu0 %578 }
  0x8a   : > { %v3650_v3 = vpop.permute.xlu2 %558 }
  0x90   : > { %v3661_v18 = vpop.permute.xlu0 %543 }
  0x91   : > { %4498 = vst [vmem:[#allocation11_spill] sm:$0xff] %v3661_v18 }
  0x92   : > { %v3663_v19 = vpop.permute.xlu2 %533 }
  0x93   : > { %4499 = vst [vmem:[#allocation12_spill] sm:$0xff] %v3663_v19 }
  0x94   : > { %1179 = vmatmul.bf16.gmra.mxu0 %v3643_v62 }
  0x95   : > { %1228 = vmatmul.bf16.gmra.mxu1 %v3648_v2 }
  0x96   : > { %1277 = vmatmul.bf16.gmra.mxu2 %v3643_v62  ;;  %1326 = vmatmul.bf16.gmra.mxu3 %v3648_v2 }
  0x97   : > { %v3677_v25 = vpop.permute.xlu1 %563 }
  0x98   : > { %v3683_v28 = vpop.permute.xlu0 %538 }
  0x99   : > { %4502 = vst [vmem:[#allocation15_spill] sm:$0xff] %v3683_v28 }
  0x9a   : > { %v3688_v29 = vpop.permute.xlu2 %528 }
  0x9b   : > { %4503 = vst [vmem:[#allocation16_spill] sm:$0xff] %v3688_v29 }
  0x9f   : > { %v3691_v30 = vpop.permute.xlu1 %568 }
  0xa0   : > { %v3693_v33 = vpop.permute.xlu0 %513 }
  0xa2   : > { %v3695_v34 = vpop.permute.xlu2 %503 }
  0xa4   : > { %1184 = vmatmul.bf16.gmra.mxu0 %v3679_v26 }
  0xa5   : > { %1233 = vmatmul.bf16.gmra.mxu1 %v3681_v27 }
  0xa6   : > { %1282 = vmatmul.bf16.gmra.mxu2 %v3679_v26  ;;  %1331 = vmatmul.bf16.gmra.mxu3 %v3681_v27 }
  0xa7   : > { %v3698_v38 = vpop.permute.xlu1 %548 }
  0xa9   : > { %v3704_v40 = vpop.permute.xlu0 %508 }
  0xaa   : > { %4504 = vst [vmem:[#allocation17_spill] sm:$0xff] %v3704_v40 }
  0xaf   : > { %v3708_v53 = vpop.permute.xlu1 %523 }
  0xb1   : > { %v1150_v35 = vpop.f32.mrf.mxu0 }
  0xb2   : > { %v1199_v36 = vpop.f32.mrf.mxu1  ;;  %v1151_v37 = vadd.f32 %v1150_v35, %v3695_v34 }
  0xb4   : > { %1345 = vmatmul.bf16.vlgmr.msrb.gmra.mxu0 %v3434_v44  ;;  %v1200_v39 = vadd.f32 %v1199_v36, %v1151_v37 }
  0xb5   : > { %1394 = vmatmul.bf16.vlgmr.msrb.gmra.mxu1 %v3439_v46 }
  0xb6   : > { %1443 = vmatmul.bf16.vlgmr.msrb.gmra.mxu2 %v3434_v44  ;;  %1492 = vmatmul.bf16.vlgmr.msrb.gmra.mxu3 %v3439_v46  ;;  %v1729_v55 = vmax.f32 %v1200_v39, 0.0 }
  0xb7   : > { %v3720_v16 = vpop.permute.xlu1 %518 }
  0xb9   : > { %v1248_v41 = vpop.f32.mrf.mxu2  ;;  %v1297_v43 = vpop.f32.mrf.mxu3 }
  0xba   : > { %v1249_v42 = vadd.f32 %v1248_v41, %v3695_v34  ;;  %v1152_v45 = vpop.f32.mrf.mxu0  ;;  %v1201_v48 = vpop.f32.mrf.mxu1 }
  0xbb   : > { %v1153_v47 = vadd.f32 %v1152_v45, %v3704_v40 }
  0xbc   : > { %v1298_v49 = vadd.f32 %v1297_v43, %v1249_v42  ;;  %v3180_v42 = vld [vmem:[%s3338_s18 + $0x2e4] sm:$0xf]  ;;  %v3040_v43 = vld [vmem:[%s3338_s18 + $0x2f8] sm:$0xf0] }
  0xbd   : > { %v1202_v50 = vadd.f32 %v1201_v48, %v1153_v47  ;;  %v3043_v48 = vor.u32 %v3180_v42, %v3040_v43 }
  0xbe   : > { %v1730_v9 = vmax.f32 %v1298_v49, 0.0  ;;  %v2846_v49 = vld [vmem:[%s3338_s18 + $0x160] sm:$0xf] }
  0xbf   : > { %v1735_v54 = vmax.f32 %v1202_v50, 0.0  ;;  %v3135_v50 = vld [vmem:[%s3338_s18 + $0x174] sm:$0xf0]  ;;  %1680 = vmatpush.bf16.msra.mxu3 %v3043_v48  ;;  %v3174_v48 = vld [vmem:[%s3338_s18 + $0x2b4] sm:$0xf] }
  0xc1   : > { %v1250_v58 = vpop.f32.mrf.mxu2  ;;  %v3710_v59 = vpack.c.bf16 %v1735_v54, %v1729_v55  ;;  %v1299_v63 = vpop.f32.mrf.mxu3  ;;  %v2847_v54 = vor.u32 %v3135_v50, %v2846_v49  ;;  %v3038_v55 = vld [vmem:[%s3338_s18 + $0x2e0] sm:$0xf]  ;;  %v3016_v49 = vld [vmem:[%s3338_s18 + $0x2c8] sm:$0xf0] }
  0xc2   : > { %v1251_v60 = vadd.f32 %v1250_v58, %v3704_v40  ;;  %v1155_v0 = vpop.f32.mrf.mxu0  ;;  %v1204_v4 = vpop.f32.mrf.mxu1  ;;  %v3183_v58 = vld [vmem:[%s3338_s18 + $0x2f4] sm:$0xf0] }
  0xc3   : > { %v1156_v1 = vadd.f32 %v1155_v0, %v3693_v33  ;;  %1533 = vmatpush.bf16.msra.mxu0 %v2847_v54 }
  0xc4   : > { %v1300_v5 = vadd.f32 %v1299_v63, %v1251_v60  ;;  %1350 = vmatmul.bf16.gmra.mxu0 %v3472_v56  ;;  %v3039_v63 = vor.u32 %v3183_v58, %v3038_v55  ;;  %v3019_v55 = vor.u32 %v3174_v48, %v3016_v49  ;;  %v2822_v58 = vld [vmem:[%s3338_s18 + $0x130] sm:$0xf] }
  0xc5   : > { %v1205_v6 = vadd.f32 %v1204_v4, %v1156_v1  ;;  %1399 = vmatmul.bf16.gmra.mxu1 %v3474_v57 }
  0xc6   : > { %v1736_v10 = vmax.f32 %v1300_v5, 0.0  ;;  %1448 = vmatmul.bf16.gmra.mxu2 %v3472_v56  ;;  %1497 = vmatmul.bf16.gmra.mxu3 %v3474_v57 }
  0xc7   : > { %v1741_v45 = vmax.f32 %v1205_v6, 0.0  ;;  %1582 = vmatpush.bf16.msra.mxu1 %v3039_v63  ;;  %1681 = vmatpush.bf16.msra.mxu3 %v3019_v55 }
  0xc8   : > { %v3722_v20 = vpack.c.bf16 %v1736_v10, %v1730_v9 }
  0xc9   : > { %v1253_v21 = vpop.f32.mrf.mxu2  ;;  %v1302_v23 = vpop.f32.mrf.mxu3 }
  0xca   : > { %4505 = vst [vmem:[#allocation18_spill] sm:$0xff] %v3722_v20  ;;  %v1254_v22 = vadd.f32 %v1253_v21, %v3693_v33  ;;  %v1157_v35 = vpop.f32.mrf.mxu0  ;;  %v1206_v37 = vpop.f32.mrf.mxu1  ;;  %v3126_v21 = vld [vmem:[%s3338_s18 + $0x134] sm:$0xf] }
  0xcb   : > { %v1158_v36 = vadd.f32 %v1157_v35, %v3720_v16 }
  0xcc   : > { %v1303_v39 = vadd.f32 %v1302_v23, %v1254_v22  ;;  %v2824_v22 = vld [vmem:[%s3338_s18 + $0x148] sm:$0xf0] }
  0xcd   : > { %v1207_v41 = vadd.f32 %v1206_v37, %v1158_v36  ;;  %v2827_v23 = vor.u32 %v3126_v21, %v2824_v22 }
  0xce   : > { %v1742_v15 = vmax.f32 %v1303_v39, 0.0 }
  0xcf   : > { %v1747_v47 = vmax.f32 %v1207_v41, 0.0  ;;  %1632 = vmatpush.bf16.msra.mxu2 %v2827_v23 }
  0xd1   : > { %v1255_v60 = vpop.f32.mrf.mxu2  ;;  %v3732_v0 = vpack.c.bf16 %v1747_v47, %v1741_v45  ;;  %v1304_v4 = vpop.f32.mrf.mxu3 }
  0xd2   : > { %v1256_v1 = vadd.f32 %v1255_v60, %v3720_v16  ;;  %v1160_v5 = vpop.f32.mrf.mxu0  ;;  %v1209_v9 = vpop.f32.mrf.mxu1  ;;  %v3129_v60 = vld [vmem:[%s3338_s18 + $0x144] sm:$0xf0] }
  0xd3   : > { %v1161_v6 = vadd.f32 %v1160_v5, %v3708_v53  ;;  %v2823_v63 = vor.u32 %v3129_v60, %v2822_v58  ;;  %v3168_v60 = vld [vmem:[%s3338_s18 + $0x284] sm:$0xf] }
  0xd4   : > { %v1305_v10 = vadd.f32 %v1304_v4, %v1256_v1  ;;  %1355 = vmatmul.bf16.gmra.mxu0 %v3509_v13  ;;  %v3014_v1 = vld [vmem:[%s3338_s18 + $0x2b0] sm:$0xf]  ;;  %v3177_v4 = vld [vmem:[%s3338_s18 + $0x2c4] sm:$0xf0] }
  0xd5   : > { %v1210_v11 = vadd.f32 %v1209_v9, %v1161_v6  ;;  %1404 = vmatmul.bf16.gmra.mxu1 %v3511_v14  ;;  %v3015_v6 = vor.u32 %v3177_v4, %v3014_v1  ;;  %1534 = vmatpush.bf16.msra.mxu0 %v2823_v63  ;;  %v2992_v63 = vld [vmem:[%s3338_s18 + $0x298] sm:$0xf0] }
  0xd6   : > { %v1748_v17 = vmax.f32 %v1305_v10, 0.0  ;;  %1453 = vmatmul.bf16.gmra.mxu2 %v3509_v13  ;;  %1502 = vmatmul.bf16.gmra.mxu3 %v3511_v14 }
  0xd7   : > { %v1753_v50 = vmax.f32 %v1210_v11, 0.0  ;;  %1583 = vmatpush.bf16.msra.mxu1 %v3015_v6  ;;  %v2798_v6 = vld [vmem:[%s3338_s18 + $0x100] sm:$0xf] }
  0xd8   : > { %v3742_v35 = vpack.c.bf16 %v1748_v17, %v1742_v15 }
  0xd9   : > { %v1258_v36 = vpop.f32.mrf.mxu2  ;;  %v1307_v39 = vpop.f32.mrf.mxu3 }
  0xda   : > { %v1259_v37 = vadd.f32 %v1258_v36, %v3708_v53  ;;  %v1162_v41 = vpop.f32.mrf.mxu0  ;;  %v1211_v43 = vpop.f32.mrf.mxu1 }
  0xdb   : > { %v1163_v42 = vadd.f32 %v1162_v41, %v3688_v29  ;;  %v2800_v41 = vld [vmem:[%s3338_s18 + $0x118] sm:$0xf0] }
  0xdc   : > { %v1308_v45 = vadd.f32 %v1307_v39, %v1259_v37  ;;  %v3120_v39 = vld [vmem:[%s3338_s18 + $0x104] sm:$0xf] }
  0xdd   : > { %v1212_v47 = vadd.f32 %v1211_v43, %v1163_v42  ;;  %v2803_v42 = vor.u32 %v3120_v39, %v2800_v41 }
  0xde   : > { %v1754_v36 = vmax.f32 %v1308_v45, 0.0 }
  0xdf   : > { %v1759_v54 = vmax.f32 %v1212_v47, 0.0  ;;  %1633 = vmatpush.bf16.msra.mxu2 %v2803_v42 }
  0xe1   : > { %v1260_v5 = vpop.f32.mrf.mxu2  ;;  %v3752_v9 = vpack.c.bf16 %v1759_v54, %v1753_v50  ;;  %v1309_v15 = vpop.f32.mrf.mxu3 }
  0xe2   : > { %v1261_v10 = vadd.f32 %v1260_v5, %v3688_v29  ;;  %v1165_v17 = vpop.f32.mrf.mxu0  ;;  %v1214_v21 = vpop.f32.mrf.mxu1  ;;  %v2995_v5 = vor.u32 %v3168_v60, %v2992_v63 }
  0xe3   : > { %v1166_v11 = vadd.f32 %v1165_v17, %v3663_v19  ;;  %v2990_v17 = vld [vmem:[%s3338_s18 + $0x280] sm:$0xf] }
  0xe4   : > { %v1310_v22 = vadd.f32 %v1309_v15, %v1261_v10  ;;  %1360 = vmatmul.bf16.gmra.mxu0 %v3537_v31  ;;  %v3123_v10 = vld [vmem:[%s3338_s18 + $0x114] sm:$0xf0]  ;;  %1682 = vmatpush.bf16.msra.mxu3 %v2995_v5 }
  0xe5   : > { %v1215_v23 = vadd.f32 %v1214_v21, %v1166_v11  ;;  %1409 = vmatmul.bf16.gmra.mxu1 %v3539_v32  ;;  %v2799_v15 = vor.u32 %v3123_v10, %v2798_v6  ;;  %v3171_v11 = vld [vmem:[%s3338_s18 + $0x294] sm:$0xf0]  ;;  %v3162_v10 = vld [vmem:[%s3338_s18 + $0x254] sm:$0xf] }
  0xe6   : > { %v1760_v37 = vmax.f32 %v1310_v22, 0.0  ;;  %1458 = vmatmul.bf16.gmra.mxu2 %v3537_v31  ;;  %1507 = vmatmul.bf16.gmra.mxu3 %v3539_v32  ;;  %v2991_v22 = vor.u32 %v3171_v11, %v2990_v17  ;;  %v2774_v11 = vld [vmem:[%s3338_s18 + $0xd0] sm:$0xf]  ;;  %v3138_v32 = vld [vmem:[%s3338_s18 + $0x194] sm:$0xf] }
  0xe7   : > { %v1765_v1 = vmax.f32 %v1215_v23, 0.0  ;;  %1535 = vmatpush.bf16.msra.mxu0 %v2799_v15  ;;  %v2968_v15 = vld [vmem:[%s3338_s18 + $0x268] sm:$0xf0] }
  0xe8   : > { %v3762_v43 = vpack.c.bf16 %v1760_v37, %v1754_v36  ;;  %1584 = vmatpush.bf16.msra.mxu1 %v2991_v22  ;;  %v2971_v17 = vor.u32 %v3162_v10, %v2968_v15  ;;  %v2752_v10 = vld [vmem:[%s3338_s18 + $0xb8] sm:$0xf0]  ;;  %v3156_v15 = vld [vmem:[%s3338_s18 + $0x224] sm:$0xf] }
  0xe9   : > { %v1263_v47 = vpop.f32.mrf.mxu2  ;;  %v1312_v45 = vpop.f32.mrf.mxu3 }
  0xea   : > { %v1264_v48 = vadd.f32 %v1263_v47, %v3663_v19  ;;  %v1167_v49 = vpop.f32.mrf.mxu0  ;;  %v1216_v54 = vpop.f32.mrf.mxu1  ;;  %1683 = vmatpush.bf16.msra.mxu3 %v2971_v17 }
  0xeb   : > { %v1168_v50 = vadd.f32 %v1167_v49, %v3683_v28 }
  0xec   : > { %v1313_v55 = vadd.f32 %v1312_v45, %v1264_v48 }
  0xed   : > { %v1217_v58 = vadd.f32 %v1216_v54, %v1168_v50  ;;  %v3114_v50 = vld [vmem:[%s3338_s18 + $0xd4] sm:$0xf]  ;;  %v2776_v54 = vld [vmem:[%s3338_s18 + $0xe8] sm:$0xf0] }
  0xee   : > { %v1766_v45 = vmax.f32 %v1313_v55, 0.0 }
  0xef   : > { %v1771_v4 = vmax.f32 %v1217_v58, 0.0  ;;  %v2779_v58 = vor.u32 %v3114_v50, %v2776_v54  ;;  %v3111_v50 = vld [vmem:[%s3338_s18 + $0xb4] sm:$0xf0]  ;;  %v2942_v54 = vld [vmem:[%s3338_s18 + $0x220] sm:$0xf] }
  0xf1   : > { %v1265_v21 = vpop.f32.mrf.mxu2  ;;  %v3772_v36 = vpack.c.bf16 %v1771_v4, %v1765_v1  ;;  %v1314_v39 = vpop.f32.mrf.mxu3  ;;  %1634 = vmatpush.bf16.msra.mxu2 %v2779_v58 }
  0xf2   : > { %v1266_v37 = vadd.f32 %v1265_v21, %v3683_v28  ;;  %v1170_v41 = vpop.f32.mrf.mxu0  ;;  %v1219_v42 = vpop.f32.mrf.mxu1  ;;  %v3117_v21 = vld [vmem:[%s3338_s18 + $0xe4] sm:$0xf0]  ;;  %v2680_v28 = vld [vmem:[%s3338_s18 + $0x28] sm:$0xf0] }
  0xf3   : > { %v1171_v23 = vadd.f32 %v1170_v41, %v3661_v18  ;;  %v2775_v22 = vor.u32 %v3117_v21, %v2774_v11  ;;  %v2944_v11 = vld [vmem:[%s3338_s18 + $0x238] sm:$0xf0] }
  0xf4   : > { %v1315_v47 = vadd.f32 %v1314_v39, %v1266_v37  ;;  %1365 = vmatmul.bf16.gmra.mxu0 %v3565_v51  ;;  %v2966_v37 = vld [vmem:[%s3338_s18 + $0x250] sm:$0xf]  ;;  %v3165_v39 = vld [vmem:[%s3338_s18 + $0x264] sm:$0xf0] }
  0xf5   : > { %v3776_v48 = vadd.f32 %v1219_v42, %v1171_v23  ;;  %1414 = vmatmul.bf16.gmra.mxu1 %v3567_v52  ;;  %v2967_v23 = vor.u32 %v3165_v39, %v2966_v37  ;;  %1536 = vmatpush.bf16.msra.mxu0 %v2775_v22  ;;  %v2947_v22 = vor.u32 %v3156_v15, %v2944_v11  ;;  %v2726_v37 = vld [vmem:[%s3338_s18 + $0x70] sm:$0xf]  ;;  %v3105_v39 = vld [vmem:[%s3338_s18 + $0x84] sm:$0xf0]  ;;  %v3150_v11 = vld [vmem:[%s3338_s18 + $0x1f4] sm:$0xf] }
  0xf6   : > { %v1772_v49 = vmax.f32 %v1315_v47, 0.0  ;;  %1463 = vmatmul.bf16.gmra.mxu2 %v3565_v51  ;;  %1512 = vmatmul.bf16.gmra.mxu3 %v3567_v52  ;;  %v3147_v51 = vld [vmem:[%s3338_s18 + $0x1d4] sm:$0xf0] }
  0xf7   : > { %1585 = vmatpush.bf16.msra.mxu1 %v2967_v23  ;;  %v2918_v23 = vld [vmem:[%s3338_s18 + $0x1f0] sm:$0xf]  ;;  %1684 = vmatpush.bf16.msra.mxu3 %v2947_v22 }
  0xf8   : > { %v3784_v60 = vpack.c.bf16 %v1772_v49, %v1766_v45  ;;  %v2750_v49 = vld [vmem:[%s3338_s18 + $0xa0] sm:$0xf] }
  0xf9   : > { %v1268_v63 = vpop.f32.mrf.mxu2  ;;  %v1317_v1 = vpop.f32.mrf.mxu3  ;;  %v2751_v58 = vor.u32 %v3111_v50, %v2750_v49 }
  0xfa   : > { %v1269_v55 = vadd.f32 %v1268_v63, %v3661_v18  ;;  %v3787_v4 = vpop.f32.mrf.mxu0  ;;  %v3789_v5 = vpop.f32.mrf.mxu1  ;;  %v3159_v63 = vld [vmem:[%s3338_s18 + $0x234] sm:$0xf0]  ;;  %v3096_v18 = vld [vmem:[%s3338_s18 + $0x44] sm:$0xf] }
  0xfb   : > { %1537 = vmatpush.bf16.msra.mxu0 %v2751_v58  ;;  %v3153_v58 = vld [vmem:[%s3338_s18 + $0x204] sm:$0xf0] }
  0xfc   : > { %v3791_v6 = vadd.f32 %v1317_v1, %v1269_v55  ;;  %v3108_v55 = vld [vmem:[%s3338_s18 + $0xa4] sm:$0xf]  ;;  %v2943_v1 = vor.u32 %v3159_v63, %v2942_v54  ;;  %v2727_v54 = vor.u32 %v3105_v39, %v2726_v37  ;;  %v3102_v63 = vld [vmem:[%s3338_s18 + $0x74] sm:$0xf]  ;;  %v3099_v37 = vld [vmem:[%s3338_s18 + $0x54] sm:$0xf0] }
  0xfd   : > { %v2755_v17 = vor.u32 %v3108_v55, %v2752_v10  ;;  %v2728_v55 = vld [vmem:[%s3338_s18 + $0x88] sm:$0xf0]  ;;  %v2919_v10 = vor.u32 %v3153_v58, %v2918_v23  ;;  %v2894_v39 = vld [vmem:[%s3338_s18 + $0x1c0] sm:$0xf]  ;;  %v2704_v23 = vld [vmem:[%s3338_s18 + $0x58] sm:$0xf0] }
  0xfe   : > { %1586 = vmatpush.bf16.msra.mxu1 %v2943_v1  ;;  %v2731_v15 = vor.u32 %v3102_v63, %v2728_v55  ;;  %v2895_v22 = vor.u32 %v3147_v51, %v2894_v39  ;;  %v3144_v58 = vld [vmem:[%s3338_s18 + $0x1c4] sm:$0xf]  ;;  %v2678_v51 = vld [vmem:[%s3338_s18 + $0x10] sm:$0xf] }
  0xff   : > { %1635 = vmatpush.bf16.msra.mxu2 %v2755_v17  ;;  %1538 = vmatpush.bf16.msra.mxu0 %v2727_v54  ;;  %v2702_v17 = vld [vmem:[%s3338_s18 + $0x40] sm:$0xf]  ;;  %v2707_v54 = vor.u32 %v3096_v18, %v2704_v23  ;;  %v2870_v18 = vld [vmem:[%s3338_s18 + $0x190] sm:$0xf] }
 0x100   : > { %v2703_v52 = vor.u32 %v3099_v37, %v2702_v17  ;;  %v1885_v55 = vld [vmem:[%s4443_s4 + $0x20] sm:$0xff]  ;;  %v3141_v17 = vld [vmem:[%s3338_s18 + $0x1a4] sm:$0xf0]  ;;  %v3090_v37 = vld [vmem:[%s3338_s18 + $0x14] sm:$0xf] }
 0x101   : > { %v3799_v41 = vpop.f32.mrf.mxu2  ;;  %v3801_v42 = vpop.f32.mrf.mxu3  ;;  %1911 = vperm.xlu0 %3233, %v1885_v55   ;;  %v2871_v23 = vor.u32 %v3141_v17, %v2870_v18 }
 0x102   : > { %v3803_v47 = vpop.f32.mrf.mxu0  ;;  %v3805_v45 = vpop.f32.mrf.mxu1  ;;  %1587 = vmatpush.bf16.msra.mxu1 %v2919_v10 }
 0x103   : > { %1636 = vmatpush.bf16.msra.mxu2 %v2731_v15  ;;  %1539 = vmatpush.bf16.msra.mxu0 %v2703_v52 }
 0x104   : > { %1370 = vmatmul.bf16.gmra.mxu0 %v3593_v7 }
 0x105   : > { %1419 = vmatmul.bf16.gmra.mxu1 %v3595_v8 }
 0x106   : > { %1468 = vmatmul.bf16.gmra.mxu2 %v3593_v7  ;;  %1517 = vmatmul.bf16.gmra.mxu3 %v3595_v8  ;;  %v2920_v8 = vld [vmem:[%s3338_s18 + $0x208] sm:$0xf0] }
 0x107   : > { %v2923_v7 = vor.u32 %v3150_v11, %v2920_v8  ;;  %v2896_v8 = vld [vmem:[%s3338_s18 + $0x1d8] sm:$0xf0]  ;;  %1588 = vmatpush.bf16.msra.mxu1 %v2895_v22  ;;  %1637 = vmatpush.bf16.msra.mxu2 %v2707_v54  ;;  %v2872_v22 = vld [vmem:[%s3338_s18 + $0x1a8] sm:$0xf0]  ;;  %v1887_v54 = vld [vmem:[%s4443_s4 + $0x30] sm:$0xff] }
 0x108   : > { %v2899_v10 = vor.u32 %v3144_v58, %v2896_v8  ;;  %v2683_v58 = vor.u32 %v3090_v37, %v2680_v28  ;;  %v2875_v8 = vor.u32 %v3138_v32, %v2872_v22  ;;  %v1884_v28 = vld [vmem:[%s4443_s4 + $0x18] sm:$0xff]  ;;  %1921 = vperm.xlu1 %3234, %v1887_v54  }
 0x109   : > { %v3819_v21 = vpop.f32.mrf.mxu2  ;;  %v3824_v49 = vpop.f32.mrf.mxu3  ;;  %1685 = vmatpush.bf16.msra.mxu3 %v2923_v7  ;;  %v3093_v7 = vld [vmem:[%s3338_s18 + $0x24] sm:$0xf0]  ;;  %1906 = vperm.xlu0 %3233, %v1884_v28  }
 0x10a   : > { %v3826_v50 = vpop.f32.mrf.mxu0  ;;  %v3831_v1 = vpop.f32.mrf.mxu1  ;;  %v2679_v52 = vor.u32 %v3093_v7, %v2678_v51  ;;  %v1886_v7 = vld [vmem:[%s4443_s4 + $0x28] sm:$0xff] }
 0x10b   : > { %1589 = vmatpush.bf16.msra.mxu1 %v2871_v23  ;;  %1638 = vmatpush.bf16.msra.mxu2 %v2683_v58  ;;  %v1881_v58 = vld [vmem:[%s4443_s4] sm:$0xff] }
 0x10c   : > { %1540 = vmatpush.bf16.msra.mxu0 %v2679_v52  ;;  %v2205_v52 = vld [vmem:[%s4445_s6 + $0x10] sm:$0xff] }
 0x10d   : > { %1686 = vmatpush.bf16.msra.mxu3 %v2899_v10 }
 0x110   : > { %1916 = vperm.xlu1 %3234, %v1886_v7  }
 0x111   : > { %v3843_v63 = vpop.f32.mrf.mxu2  ;;  %v3850_v15 = vpop.f32.mrf.mxu3  ;;  %1687 = vmatpush.bf16.msra.mxu3 %v2875_v8  ;;  %2219 = vperm.xlu0 %3233, %v2205_v52   ;;  %v2204_v8 = vld [vmem:[%s4445_s6 + $0x8] sm:$0xff] }
 0x112   : > { %v1180_v11 = vpop.f32.mrf.mxu0  ;;  %v1229_v39 = vpop.f32.mrf.mxu1 }
 0x114   : > { %1375 = vmatmul.bf16.gmra.mxu0 %v3643_v62 }
 0x115   : > { %1424 = vmatmul.bf16.gmra.mxu1 %v3648_v2 }
 0x116   : > { %1473 = vmatmul.bf16.gmra.mxu2 %v3643_v62  ;;  %1522 = vmatmul.bf16.gmra.mxu3 %v3648_v2  ;;  %v1178_v62 = vadd.f32 %v3826_v50, %v3650_v3 }
 0x118   : > { %1891 = vperm.xlu1 %3234, %v1881_v58   ;;  %v1227_v50 = vadd.f32 %v3831_v1, %v1178_v62 }
 0x119   : > { %v1278_v32 = vpop.f32.mrf.mxu2  ;;  %v3868_v55 = vpop.f32.mrf.mxu3  ;;  %2214 = vperm.xlu0 %3233, %v2204_v8  }
 0x11a   : > { %v1182_v10 = vpop.f32.mrf.mxu0  ;;  %v1231_v51 = vpop.f32.mrf.mxu1 }
 0x11b   : > { %v1183_v54 = vadd.f32 %v1182_v10, %v3691_v30  ;;  %v1176_v10 = vadd.f32 %v3803_v47, %v3612_v24  ;;  %v1279_v47 = vadd.f32 %v1278_v32, %v3677_v25 }
 0x11d   : > { %v1232_v31 = vadd.f32 %v1231_v51, %v1183_v54  ;;  %v1225_v54 = vadd.f32 %v3805_v45, %v1176_v10  ;;  %v1274_v45 = vadd.f32 %v3819_v21, %v3612_v24  ;;  %v1328_v32 = vadd.f32 %v3868_v55, %v1279_v47 }
 0x11e   : > { %v1271_v55 = vadd.f32 %v3799_v41, %v3698_v38 }
 0x121   : > { %v1280_v18 = vpop.f32.mrf.mxu2  ;;  %v1329_v17 = vpop.f32.mrf.mxu3 }
 0x122   : > { %v1185_v37 = vpop.f32.mrf.mxu0  ;;  %v1234_v23 = vpop.f32.mrf.mxu1 }
 0x123   : > { %v1186_v22 = vadd.f32 %v1185_v37, %v3603_v12 }
 0x124   : > { %1380 = vmatmul.bf16.gmra.mxu0 %v3679_v26 }
 0x125   : > { %1429 = vmatmul.bf16.gmra.mxu1 %v3681_v27  ;;  %v1235_v37 = vadd.f32 %v1234_v23, %v1186_v22  ;;  %v1281_v23 = vadd.f32 %v1280_v18, %v3691_v30  ;;  %v1173_v22 = vadd.f32 %v3787_v4, %v3698_v38  ;;  %v1795_v4 = vmax.f32 %v1227_v50, 0.0 }
 0x126   : > { %1478 = vmatmul.bf16.gmra.mxu2 %v3679_v26  ;;  %1527 = vmatmul.bf16.gmra.mxu3 %v3681_v27  ;;  %v1181_v26 = vadd.f32 %v1180_v11, %v3677_v25  ;;  %v2206_v11 = vld [vmem:[%s4445_s6 + $0x18] sm:$0xff] }
 0x127   : > { %v1813_v20 = vmax.f32 %v1235_v37, 0.0  ;;  %2224 = vperm.xlu1 %3234, %v2206_v11  }
 0x128   : > { %v1230_v58 = vadd.f32 %v1229_v39, %v1181_v26 }
 0x129   : > { %v1283_v28 = vpop.f32.mrf.mxu2  ;;  %v1332_v7 = vpop.f32.mrf.mxu3 }
 0x12a   : > { %v1187_v52 = vpop.f32.mrf.mxu0  ;;  %v1236_v2 = vpop.f32.mrf.mxu1  ;;  %v1284_v29 = vadd.f32 %v1283_v28, %v3603_v12  ;;  %v1801_v28 = vmax.f32 %v1230_v58, 0.0 }
 0x12b   : > { %v1188_v27 = vadd.f32 %v1187_v52, %v3641_v61 }
 0x12c   : > { %v1333_v26 = vadd.f32 %v1332_v7, %v1284_v29 }
 0x12d   : > { %v1237_v19 = vadd.f32 %v1236_v2, %v1188_v27  ;;  %v1807_v2 = vmax.f32 %v1232_v31, 0.0  ;;  %v1276_v31 = vadd.f32 %v3843_v63, %v3650_v3  ;;  %v1789_v63 = vmax.f32 %v1225_v54, 0.0 }
 0x12e   : > { %v1814_v7 = vmax.f32 %v1333_v26, 0.0 }
 0x12f   : > { %v1819_v14 = vmax.f32 %v1237_v19, 0.0  ;;  %v1861_v1 = vpack.c.bf16 %v1807_v2, %v1801_v28 }
 0x131   : > { %v1867_v27 = vpack.c.bf16 %v1819_v14, %v1813_v20  ;;  %v1285_v51 = vpop.f32.mrf.mxu2  ;;  %v1334_v39 = vpop.f32.mrf.mxu3  ;;  %v1330_v14 = vadd.f32 %v1329_v17, %v1281_v23  ;;  %v1222_v20 = vadd.f32 %v3789_v5, %v1173_v22  ;;  %v2395_v5 = vld [vmem:[%s4447_s8] sm:$0x1f]  ;;  %v1325_v17 = vadd.f32 %v3850_v15, %v1276_v31 }
 0x132   : > { %v1286_v19 = vadd.f32 %v1285_v51, %v3641_v61  ;;  %v1346_v8 = vpop.f32.mrf.mxu0  ;;  %v1395_v52 = vpop.f32.mrf.mxu1  ;;  %v1855_v23 = vpack.c.bf16 %v1795_v4, %v1789_v63  ;;  %2398 = vperm.xlu1 %3234, %v2395_v5   ;;  %v1802_v22 = vmax.f32 %v1328_v32, 0.0  ;;  %v1778_v4 = vmax.f32 %v3791_v6, 0.0  ;;  %v1888_v6 = vld [vmem:[%s4443_s4 + $0x38] sm:$0xff] }
 0x133   : > { %v1347_v18 = vadd.f32 %v1346_v8, %v3695_v34  ;;  %1953 = vmatpush.bf16.msrb.mxu0 %v1867_v27  ;;  %v1808_v10 = vmax.f32 %v1330_v14, 0.0  ;;  %v1783_v58 = vmax.f32 %v1222_v20, 0.0  ;;  %v1777_v27 = vmax.f32 %v3776_v48, 0.0  ;;  %1926 = vperm.xlu2 %3235, %v1888_v6  }
 0x134   : > { %v1335_v62 = vadd.f32 %v1334_v39, %v1286_v19  ;;  %1541 = vmatmul.bf16.vlgmr.msra.gmra.mxu0 %v3434_v44  ;;  %v1796_v47 = vmax.f32 %v1325_v17, 0.0  ;;  %v1320_v19 = vadd.f32 %v3801_v42, %v1271_v55 }
 0x135   : > { %v1396_v29 = vadd.f32 %v1395_v52, %v1347_v18  ;;  %1590 = vmatmul.bf16.vlgmr.msra.gmra.mxu1 %v3439_v46  ;;  %v1862_v41 = vpack.c.bf16 %v1808_v10, %v1802_v22  ;;  %v1849_v8 = vpack.c.bf16 %v1783_v58, %v1777_v27 }
 0x136   : > { %v1820_v37 = vmax.f32 %v1335_v62, 0.0  ;;  %1639 = vmatmul.bf16.vlgmr.msra.gmra.mxu2 %v3434_v44  ;;  %1688 = vmatmul.bf16.vlgmr.msra.gmra.mxu3 %v3439_v46  ;;  %v1323_v44 = vadd.f32 %v3824_v49, %v1274_v45  ;;  %v1784_v52 = vmax.f32 %v1320_v19, 0.0 }
 0x137   : > { %1954 = vmatpush.bf16.msrb.mxu0 %v1861_v1  ;;  %v1731_v54 = vmax.f32 %v1396_v29, 0.0 }
 0x138   : > { %v1868_v21 = vpack.c.bf16 %v1820_v37, %v1814_v7  ;;  %v1790_v49 = vmax.f32 %v1323_v44, 0.0  ;;  %v1850_v32 = vpack.c.bf16 %v1784_v52, %v1778_v4 }
 0x139   : > { %v1444_v11 = vpop.f32.mrf.mxu2  ;;  %v1493_v50 = vpop.f32.mrf.mxu3 }
 0x13a   : > { %v1445_v46 = vadd.f32 %v1444_v11, %v3695_v34  ;;  %1982 = vmatpush.bf16.msrb.mxu1 %v1868_v21  ;;  %v1348_v2 = vpop.f32.mrf.mxu0  ;;  %v1397_v51 = vpop.f32.mrf.mxu1  ;;  %v1856_v18 = vpack.c.bf16 %v1796_v47, %v1790_v49 }
 0x13b   : > { %v1349_v15 = vadd.f32 %v1348_v2, %v3704_v40  ;;  %1955 = vmatpush.bf16.msrb.mxu0 %v1855_v23 }
 0x13c   : > { %v1494_v26 = vadd.f32 %v1493_v50, %v1445_v46 }
 0x13d   : > { %v1398_v39 = vadd.f32 %v1397_v51, %v1349_v15  ;;  %v4507_v51 = vld [vmem:[#allocation18_spill] sm:$0xff] }
 0x13e   : > { %1983 = vmatpush.bf16.msrb.mxu1 %v1862_v41  ;;  %v1732_v7 = vmax.f32 %v1494_v26, 0.0 }
 0x13f   : > { %v1737_v28 = vmax.f32 %v1398_v39, 0.0  ;;  %1956 = vmatpush.bf16.msrb.mxu0 %v1849_v8  ;;  %v4508_v8 = vld [vmem:[#allocation16_spill] sm:$0xff] }
 0x141   : > { %v1446_v31 = vpop.f32.mrf.mxu2  ;;  %v3927_v48 = vpack.c.bf16 %v1737_v28, %v1731_v54  ;;  %v1495_v62 = vpop.f32.mrf.mxu3 }
 0x142   : > { %v1447_v14 = vadd.f32 %v1446_v31, %v3704_v40  ;;  %1984 = vmatpush.bf16.msrb.mxu1 %v1856_v18  ;;  %v1351_v20 = vpop.f32.mrf.mxu0  ;;  %v1400_v1 = vpop.f32.mrf.mxu1  ;;  %v2203_v31 = vld [vmem:[%s4445_s6] sm:$0xff] }
 0x143   : > { %v1352_v42 = vadd.f32 %v1351_v20, %v3693_v33  ;;  %1957 = vmatpush.bf16.msrb.mxu0 %v3772_v36 }
 0x144   : > { %v1496_v29 = vadd.f32 %v1495_v62, %v1447_v14  ;;  %1546 = vmatmul.bf16.gmra.mxu0 %v3472_v56 }
 0x145   : > { %v1401_v45 = vadd.f32 %v1400_v1, %v1352_v42  ;;  %1595 = vmatmul.bf16.gmra.mxu1 %v3474_v57  ;;  %v4509_v1 = vld [vmem:[#allocation12_spill] sm:$0xff] }
 0x146   : > { %v1738_v37 = vmax.f32 %v1496_v29, 0.0  ;;  %1644 = vmatmul.bf16.gmra.mxu2 %v3472_v56  ;;  %1693 = vmatmul.bf16.gmra.mxu3 %v3474_v57 }
 0x147   : > { %1985 = vmatpush.bf16.msrb.mxu1 %v1850_v32  ;;  %1958 = vmatpush.bf16.msrb.mxu0 %v3752_v9  ;;  %v1743_v55 = vmax.f32 %v1401_v45, 0.0  ;;  %v1883_v9 = vld [vmem:[%s4443_s4 + $0x10] sm:$0xff] }
 0x148   : > { %v3941_v36 = vpack.c.bf16 %v1738_v37, %v1732_v7  ;;  %1901 = vperm.xlu2 %3235, %v1883_v9   ;;  %v4510_v37 = vld [vmem:[#allocation3_spill] sm:$0xff] }
 0x149   : > { %v1449_v63 = vpop.f32.mrf.mxu2  ;;  %v1498_v17 = vpop.f32.mrf.mxu3 }
 0x14a   : > { %v1450_v5 = vadd.f32 %v1449_v63, %v3693_v33  ;;  %v1353_v10 = vpop.f32.mrf.mxu0  ;;  %v1402_v57 = vpop.f32.mrf.mxu1 }
 0x14b   : > { %1986 = vmatpush.bf16.msrb.mxu1 %v3784_v60  ;;  %v1354_v56 = vadd.f32 %v1353_v10, %v3720_v16  ;;  %1959 = vmatpush.bf16.msrb.mxu0 %v3732_v0 }
 0x14c   : > { %v1499_v21 = vadd.f32 %v1498_v17, %v1450_v5  ;;  %v4511_v5 = vld [vmem:[#allocation4_spill] sm:$0xff] }
 0x14d   : > { %v1403_v58 = vadd.f32 %v1402_v57, %v1354_v56 }
 0x14e   : > { %v1744_v27 = vmax.f32 %v1499_v21, 0.0 }
 0x14f   : > { %v1749_v11 = vmax.f32 %v1403_v58, 0.0  ;;  %1987 = vmatpush.bf16.msrb.mxu1 %v3762_v43  ;;  %1960 = vmatpush.bf16.msrb.mxu0 %v3710_v59  ;;  %v4506_v59 = vld [vmem:[#allocation2_spill] sm:$0xff]  ;;  %v4512_v58 = vld [vmem:[#allocation15_spill] sm:$0xff] }
 0x151   : > { %v1451_v23 = vpop.f32.mrf.mxu2  ;;  %v3952_v60 = vpack.c.bf16 %v1749_v11, %v1743_v55  ;;  %v1500_v22 = vpop.f32.mrf.mxu3 }
 0x152   : > { %v1452_v44 = vadd.f32 %v1451_v23, %v3720_v16  ;;  %v1356_v46 = vpop.f32.mrf.mxu0  ;;  %v1405_v50 = vpop.f32.mrf.mxu1 }
 0x153   : > { %1988 = vmatpush.bf16.msrb.mxu1 %v3742_v35  ;;  %v1357_v0 = vadd.f32 %v1356_v46, %v3708_v53  ;;  %v1882_v35 = vld [vmem:[%s4443_s4 + $0x8] sm:$0xff] }
 0x154   : > { %v1501_v43 = vadd.f32 %v1500_v22, %v1452_v44  ;;  %1551 = vmatmul.bf16.gmra.mxu0 %v3509_v13  ;;  %1896 = vperm.xlu2 %3235, %v1882_v35  }
 0x155   : > { %v1406_v2 = vadd.f32 %v1405_v50, %v1357_v0  ;;  %1600 = vmatmul.bf16.gmra.mxu1 %v4506_v59 }
 0x156   : > { %v1750_v15 = vmax.f32 %v1501_v43, 0.0  ;;  %1649 = vmatmul.bf16.gmra.mxu2 %v3509_v13  ;;  %1698 = vmatmul.bf16.gmra.mxu3 %v4506_v59 }
 0x157   : > { %1989 = vmatpush.bf16.msrb.mxu1 %v4507_v51  ;;  %v1755_v18 = vmax.f32 %v1406_v2, 0.0 }
 0x158   : > { %v3965_v47 = vpack.c.bf16 %v1750_v15, %v1744_v27  ;;  %v4513_v27 = vld [vmem:[#allocation11_spill] sm:$0xff] }
 0x159   : > { %v1454_v26 = vpop.f32.mrf.mxu2  ;;  %v1503_v19 = vpop.f32.mrf.mxu3 }
 0x15a   : > { %v1455_v41 = vadd.f32 %v1454_v26, %v3708_v53  ;;  %v1358_v39 = vpop.f32.mrf.mxu0  ;;  %v1407_v54 = vpop.f32.mrf.mxu1  ;;  %v4514_v26 = vld [vmem:[#allocation5_spill] sm:$0xff] }
 0x15b   : > { %v1359_v49 = vadd.f32 %v1358_v39, %v4508_v8  ;;  %v4515_v39 = vld [vmem:[#allocation6_spill] sm:$0xff] }
 0x15c   : > { %v1504_v13 = vadd.f32 %v1503_v19, %v1455_v41  ;;  %2209 = vperm.xlu2 %3235, %v2203_v31  }
 0x15d   : > { %v1408_v28 = vadd.f32 %v1407_v54, %v1359_v49 }
 0x15e   : > { %v1756_v6 = vmax.f32 %v1504_v13, 0.0 }
 0x15f   : > { %v1761_v52 = vmax.f32 %v1408_v28, 0.0 }
 0x161   : > { %v1456_v14 = vpop.f32.mrf.mxu2  ;;  %v3972_v62 = vpack.c.bf16 %v1761_v52, %v1755_v18  ;;  %v1505_v4 = vpop.f32.mrf.mxu3 }
 0x162   : > { %v1457_v20 = vadd.f32 %v1456_v14, %v4508_v8  ;;  %v1361_v42 = vpop.f32.mrf.mxu0  ;;  %v1410_v45 = vpop.f32.mrf.mxu1 }
 0x163   : > { %v1362_v29 = vadd.f32 %v1361_v42, %v4509_v1 }
 0x164   : > { %v1506_v32 = vadd.f32 %v1505_v4, %v1457_v20  ;;  %1556 = vmatmul.bf16.gmra.mxu0 %v4510_v37 }
 0x165   : > { %v1411_v7 = vadd.f32 %v1410_v45, %v1362_v29  ;;  %1605 = vmatmul.bf16.gmra.mxu1 %v4511_v5  ;;  %v4516_v29 = vld [vmem:[#allocation7_spill] sm:$0xff]  ;;  %v4517_v45 = vld [vmem:[#allocation8_spill] sm:$0xff] }
 0x166   : > { %v1762_v63 = vmax.f32 %v1506_v32, 0.0  ;;  %1654 = vmatmul.bf16.gmra.mxu2 %v4510_v37  ;;  %1703 = vmatmul.bf16.gmra.mxu3 %v4511_v5 }
 0x167   : > { %v1767_v44 = vmax.f32 %v1411_v7, 0.0 }
 0x168   : > { %v3980_v17 = vpack.c.bf16 %v1762_v63, %v1756_v6 }
 0x169   : > { %v1459_v10 = vpop.f32.mrf.mxu2  ;;  %v1508_v57 = vpop.f32.mrf.mxu3 }
 0x16a   : > { %v1460_v56 = vadd.f32 %v1459_v10, %v4509_v1  ;;  %v1363_v21 = vpop.f32.mrf.mxu0  ;;  %v1412_v11 = vpop.f32.mrf.mxu1 }
 0x16b   : > { %v1364_v55 = vadd.f32 %v1363_v21, %v4512_v58  ;;  %v4519_v21 = vld [vmem:[#allocation10_spill] sm:$0xff] }
 0x16c   : > { %v1509_v9 = vadd.f32 %v1508_v57, %v1460_v56  ;;  %v4518_v57 = vld [vmem:[#allocation9_spill] sm:$0xff] }
 0x16d   : > { %v1413_v23 = vadd.f32 %v1412_v11, %v1364_v55 }
 0x16e   : > { %v1768_v41 = vmax.f32 %v1509_v9, 0.0 }
 0x16f   : > { %v1773_v22 = vmax.f32 %v1413_v23, 0.0 }
 0x171   : > { %v1461_v46 = vpop.f32.mrf.mxu2  ;;  %v3984_v0 = vpack.c.bf16 %v1773_v22, %v1767_v44  ;;  %v1510_v43 = vpop.f32.mrf.mxu3 }
 0x172   : > { %v1462_v50 = vadd.f32 %v1461_v46, %v4512_v58  ;;  %v1366_v2 = vpop.f32.mrf.mxu0  ;;  %v1415_v59 = vpop.f32.mrf.mxu1 }
 0x173   : > { %v1367_v15 = vadd.f32 %v1366_v2, %v4513_v27  ;;  %v4521_v2 = vld [vmem:[#allocation14_spill] sm:$0xff] }
 0x174   : > { %v1511_v51 = vadd.f32 %v1510_v43, %v1462_v50  ;;  %1561 = vmatmul.bf16.gmra.mxu0 %v4514_v26  ;;  %v4520_v43 = vld [vmem:[#allocation13_spill] sm:$0xff] }
 0x175   : > { %v3988_v35 = vadd.f32 %v1415_v59, %v1367_v15  ;;  %1610 = vmatmul.bf16.gmra.mxu1 %v4515_v39 }
 0x176   : > { %v1774_v19 = vmax.f32 %v1511_v51, 0.0  ;;  %1659 = vmatmul.bf16.gmra.mxu2 %v4514_v26  ;;  %1708 = vmatmul.bf16.gmra.mxu3 %v4515_v39 }
 0x178   : > { %v3994_v49 = vpack.c.bf16 %v1774_v19, %v1768_v41 }
 0x179   : > { %v1464_v54 = vpop.f32.mrf.mxu2  ;;  %v1513_v28 = vpop.f32.mrf.mxu3 }
 0x17a   : > { %v1465_v13 = vadd.f32 %v1464_v54, %v4513_v27  ;;  %v1368_v18 = vpop.f32.mrf.mxu0  ;;  %v3997_v52 = vpop.f32.mrf.mxu1 }
 0x17b   : > { %v1369_v40 = vadd.f32 %v1368_v18, %v3698_v38 }
 0x17c   : > { %v3999_v31 = vadd.f32 %v1513_v28, %v1465_v13 }
 0x181   : > { %v4001_v14 = vpop.f32.mrf.mxu2  ;;  %v4003_v20 = vpop.f32.mrf.mxu3 }
 0x182   : > { %v1371_v4 = vpop.f32.mrf.mxu0  ;;  %v1420_v42 = vpop.f32.mrf.mxu1 }
 0x184   : > { %1566 = vmatmul.bf16.gmra.mxu0 %v4516_v29 }
 0x185   : > { %1615 = vmatmul.bf16.gmra.mxu1 %v4517_v45 }
 0x186   : > { %1664 = vmatmul.bf16.gmra.mxu2 %v4516_v29  ;;  %1713 = vmatmul.bf16.gmra.mxu3 %v4517_v45 }
 0x189   : > { %v4009_v32 = vpop.f32.mrf.mxu2  ;;  %v4011_v7 = vpop.f32.mrf.mxu3 }
 0x18a   : > { %v1373_v37 = vpop.f32.mrf.mxu0  ;;  %v1422_v6 = vpop.f32.mrf.mxu1 }
 0x18b   : > { %v1374_v28 = vadd.f32 %v1373_v37, %v3650_v3  ;;  %v4035_v37 = vld [vmem:[%s4442_s3] sm:$0xff] }
 0x18c   : > { %4522 = vst [vmem:[#allocation2_spill] sm:$0xff] %v4035_v37 }
 0x191   : > { %v1471_v63 = vpop.f32.mrf.mxu2  ;;  %v4013_v5 = vpop.f32.mrf.mxu3 }
 0x192   : > { %v1376_v10 = vpop.f32.mrf.mxu0  ;;  %v1425_v56 = vpop.f32.mrf.mxu1 }
 0x193   : > { %v1377_v19 = vadd.f32 %v1376_v10, %v3677_v25  ;;  %v1423_v10 = vadd.f32 %v1422_v6, %v1374_v28  ;;  %v1418_v28 = vadd.f32 %v3997_v52, %v1369_v40 }
 0x194   : > { %1571 = vmatmul.bf16.gmra.mxu0 %v4518_v57 }
 0x195   : > { %1620 = vmatmul.bf16.gmra.mxu1 %v4519_v21 }
 0x196   : > { %1669 = vmatmul.bf16.gmra.mxu2 %v4518_v57  ;;  %1718 = vmatmul.bf16.gmra.mxu3 %v4519_v21  ;;  %v1372_v21 = vadd.f32 %v1371_v4, %v3612_v24 }
 0x199   : > { %v1474_v55 = vpop.f32.mrf.mxu2  ;;  %v1523_v11 = vpop.f32.mrf.mxu3 }
 0x19a   : > { %v1378_v9 = vpop.f32.mrf.mxu0  ;;  %v1427_v23 = vpop.f32.mrf.mxu1 }
 0x19b   : > { %v1379_v59 = vadd.f32 %v1378_v9, %v3691_v30 }
 0x19d   : > { %v1428_v29 = vadd.f32 %v1427_v23, %v1379_v59  ;;  %v1475_v23 = vadd.f32 %v1474_v55, %v3677_v25 }
 0x1a1   : > { %v1476_v44 = vpop.f32.mrf.mxu2  ;;  %v1525_v22 = vpop.f32.mrf.mxu3 }
 0x1a2   : > { %v1381_v46 = vpop.f32.mrf.mxu0  ;;  %v1430_v50 = vpop.f32.mrf.mxu1 }
 0x1a3   : > { %v1382_v15 = vadd.f32 %v1381_v46, %v3603_v12  ;;  %v1426_v46 = vadd.f32 %v1425_v56, %v1377_v19  ;;  %v1421_v19 = vadd.f32 %v1420_v42, %v1372_v21  ;;  %v1470_v42 = vadd.f32 %v4009_v32, %v3612_v24 }
 0x1a4   : > { %1576 = vmatmul.bf16.gmra.mxu0 %v4520_v43 }
 0x1a5   : > { %1625 = vmatmul.bf16.gmra.mxu1 %v4521_v2  ;;  %v1431_v39 = vadd.f32 %v1430_v50, %v1382_v15  ;;  %v1809_v50 = vmax.f32 %v1428_v29, 0.0  ;;  %v1797_v29 = vmax.f32 %v1423_v10, 0.0  ;;  %v1519_v10 = vadd.f32 %v4011_v7, %v1470_v42 }
 0x1a6   : > { %1674 = vmatmul.bf16.gmra.mxu2 %v4520_v43  ;;  %1723 = vmatmul.bf16.gmra.mxu3 %v4521_v2  ;;  %v1477_v2 = vadd.f32 %v1476_v44, %v3691_v30  ;;  %v1803_v44 = vmax.f32 %v1426_v46, 0.0  ;;  %v1791_v46 = vmax.f32 %v1421_v19, 0.0 }
 0x1a7   : > { %v1815_v43 = vmax.f32 %v1431_v39, 0.0  ;;  %v1472_v39 = vadd.f32 %v1471_v63, %v3650_v3  ;;  %v1467_v63 = vadd.f32 %v4001_v14, %v3698_v38  ;;  %v1792_v7 = vmax.f32 %v1519_v10, 0.0 }
 0x1a8   : > { %v1863_v55 = vpack.c.bf16 %v1809_v50, %v1803_v44  ;;  %v1780_v44 = vmax.f32 %v3999_v31, 0.0 }
 0x1a9   : > { %v1479_v51 = vpop.f32.mrf.mxu2  ;;  %v1528_v26 = vpop.f32.mrf.mxu3  ;;  %v1521_v40 = vadd.f32 %v4013_v5, %v1472_v39  ;;  %v1516_v14 = vadd.f32 %v4003_v20, %v1467_v63 }
 0x1aa   : > { %v1383_v41 = vpop.f32.mrf.mxu0  ;;  %v1432_v13 = vpop.f32.mrf.mxu1  ;;  %v1480_v57 = vadd.f32 %v1479_v51, %v3603_v12 }
 0x1ab   : > { %v1384_v54 = vadd.f32 %v1383_v41, %v3641_v61  ;;  %v1798_v5 = vmax.f32 %v1521_v40, 0.0 }
 0x1ac   : > { %v1529_v59 = vadd.f32 %v1528_v26, %v1480_v57  ;;  %v1524_v26 = vadd.f32 %v1523_v11, %v1475_v23 }
 0x1ad   : > { %v1433_v45 = vadd.f32 %v1432_v13, %v1384_v54  ;;  %v1526_v54 = vadd.f32 %v1525_v22, %v1477_v2  ;;  %v1857_v2 = vpack.c.bf16 %v1797_v29, %v1791_v46 }
 0x1ae   : > { %v1816_v57 = vmax.f32 %v1529_v59, 0.0  ;;  %v1804_v32 = vmax.f32 %v1524_v26, 0.0 }
 0x1af   : > { %v1821_v9 = vmax.f32 %v1433_v45, 0.0  ;;  %v1810_v52 = vmax.f32 %v1526_v54, 0.0 }
 0x1b1   : > { %v1869_v15 = vpack.c.bf16 %v1821_v9, %v1815_v43  ;;  %v1481_v41 = vpop.f32.mrf.mxu2  ;;  %v1530_v56 = vpop.f32.mrf.mxu3  ;;  %v1785_v43 = vmax.f32 %v1418_v28, 0.0 }
 0x1b2   : > { %v1482_v4 = vadd.f32 %v1481_v41, %v3641_v61  ;;  %v1542_v51 = vpop.f32.mrf.mxu0  ;;  %v1591_v6 = vpop.f32.mrf.mxu1  ;;  %v1779_v41 = vmax.f32 %v3988_v35, 0.0  ;;  %v4066_v35 = vld [vmem:[%s4442_s3 + $0x8] sm:$0xff] }
 0x1b3   : > { %v1543_v18 = vadd.f32 %v1542_v51, %v3695_v34  ;;  %2011 = vmatpush.bf16.msrb.mxu2 %v1869_v15  ;;  %v1858_v51 = vpack.c.bf16 %v1798_v5, %v1792_v7  ;;  %4527 = vst [vmem:[#allocation4_spill] sm:$0xff] %v4066_v35 }
 0x1b4   : > { %v1531_v13 = vadd.f32 %v1530_v56, %v1482_v4  ;;  %1961 = vmatmul.bf16.vlgmr.msrb.gmra.mxu0 %v4035_v37  ;;  %v1864_v4 = vpack.c.bf16 %v1810_v52, %v1804_v32  ;;  %v1851_v56 = vpack.c.bf16 %v1785_v43, %v1779_v41 }
 0x1b5   : > { %v4042_v45 = vadd.f32 %v1591_v6, %v1543_v18  ;;  %1990 = vmatmul.bf16.vlgmr.msrb.gmra.mxu1 %v4035_v37 }
 0x1b6   : > { %v1822_v21 = vmax.f32 %v1531_v13, 0.0 }
 0x1b7   : > { %4523 = vst [vmem:[#allocation18_spill] sm:$0xff] %v4042_v45  ;;  %2012 = vmatpush.bf16.msrb.mxu2 %v1863_v55 }
 0x1b8   : > { %v1870_v22 = vpack.c.bf16 %v1822_v21, %v1816_v57 }
 0x1b9   : > { %v1640_v9 = vpop.f32.mrf.mxu2  ;;  %v1689_v50 = vpop.f32.mrf.mxu3 }
 0x1ba   : > { %v1641_v11 = vadd.f32 %v1640_v9, %v3695_v34  ;;  %2040 = vmatpush.bf16.msrb.mxu3 %v1870_v22  ;;  %v4053_v15 = vpop.f32.mrf.mxu0  ;;  %v4056_v23 = vpop.f32.mrf.mxu1  ;;  %v1786_v34 = vmax.f32 %v1516_v14, 0.0  ;;  %v4119_v22 = vld [vmem:[%s4442_s3 + $0x18] sm:$0xff] }
 0x1bb   : > { %4524 = vst [vmem:[#allocation16_spill] sm:$0xff] %v4056_v23  ;;  %2013 = vmatpush.bf16.msrb.mxu2 %v1857_v2 }
 0x1bc   : > { %v4059_v59 = vadd.f32 %v1689_v50, %v1641_v11  ;;  %v1852_v54 = vpack.c.bf16 %v1786_v34, %v1780_v44  ;;  %4535 = vst [vmem:[#allocation10_spill] sm:$0xff] %v4119_v22 }
 0x1be   : > { %4525 = vst [vmem:[#allocation12_spill] sm:$0xff] %v4059_v59  ;;  %2041 = vmatpush.bf16.msrb.mxu3 %v1864_v4 }
 0x1bf   : > { %2014 = vmatpush.bf16.msrb.mxu2 %v1851_v56 }
 0x1c1   : > { %v4061_v19 = vpop.f32.mrf.mxu2  ;;  %v4069_v20 = vpop.f32.mrf.mxu3 }
 0x1c2   : > { %4526 = vst [vmem:[#allocation3_spill] sm:$0xff] %v4061_v19  ;;  %2042 = vmatpush.bf16.msrb.mxu3 %v1858_v51  ;;  %v1547_v18 = vpop.f32.mrf.mxu0  ;;  %v1596_v39 = vpop.f32.mrf.mxu1 }
 0x1c3   : > { %4528 = vst [vmem:[#allocation15_spill] sm:$0xff] %v4069_v20  ;;  %v1548_v6 = vadd.f32 %v1547_v18, %v3693_v33  ;;  %2015 = vmatpush.bf16.msrb.mxu2 %v3984_v0 }
 0x1c4   : > { %1966 = vmatmul.bf16.gmra.mxu0 %v4066_v35 }
 0x1c5   : > { %v4073_v13 = vadd.f32 %v1596_v39, %v1548_v6  ;;  %1995 = vmatmul.bf16.gmra.mxu1 %v4066_v35 }
 0x1c6   : > { %2043 = vmatpush.bf16.msrb.mxu3 %v1852_v54 }
 0x1c7   : > { %4529 = vst [vmem:[#allocation11_spill] sm:$0xff] %v4073_v13  ;;  %2016 = vmatpush.bf16.msrb.mxu2 %v3972_v62 }
 0x1c9   : > { %v1645_v31 = vpop.f32.mrf.mxu2  ;;  %v1694_v29 = vpop.f32.mrf.mxu3 }
 0x1ca   : > { %v1646_v28 = vadd.f32 %v1645_v31, %v3693_v33  ;;  %2044 = vmatpush.bf16.msrb.mxu3 %v3994_v49  ;;  %v4080_v55 = vpop.f32.mrf.mxu0  ;;  %v4082_v42 = vpop.f32.mrf.mxu1  ;;  %v4094_v33 = vld [vmem:[%s4442_s3 + $0x10] sm:$0xff] }
 0x1cb   : > { %2017 = vmatpush.bf16.msrb.mxu2 %v3952_v60  ;;  %4532 = vst [vmem:[#allocation7_spill] sm:$0xff] %v4094_v33 }
 0x1cc   : > { %v4085_v0 = vadd.f32 %v1694_v29, %v1646_v28 }
 0x1ce   : > { %4530 = vst [vmem:[#allocation5_spill] sm:$0xff] %v4085_v0  ;;  %2045 = vmatpush.bf16.msrb.mxu3 %v3980_v17 }
 0x1cf   : > { %2018 = vmatpush.bf16.msrb.mxu2 %v3927_v48 }
 0x1d1   : > { %v4089_v26 = vpop.f32.mrf.mxu2  ;;  %v4096_v62 = vpop.f32.mrf.mxu3 }
 0x1d2   : > { %4531 = vst [vmem:[#allocation6_spill] sm:$0xff] %v4089_v26  ;;  %2046 = vmatpush.bf16.msrb.mxu3 %v3965_v47  ;;  %v1552_v49 = vpop.f32.mrf.mxu0  ;;  %2019 = vmatmul.bf16.vlgmr.msrb.gmra.mxu2 %v4035_v37  ;;  %v1601_v57 = vpop.f32.mrf.mxu1 }
 0x1d3   : > { %4533 = vst [vmem:[#allocation8_spill] sm:$0xff] %v4096_v62  ;;  %v1553_v60 = vadd.f32 %v1552_v49, %v3708_v53 }
 0x1d4   : > { %1971 = vmatmul.bf16.gmra.mxu0 %v4094_v33 }
 0x1d5   : > { %v4101_v17 = vadd.f32 %v1601_v57, %v1553_v60  ;;  %2000 = vmatmul.bf16.gmra.mxu1 %v4094_v33 }
 0x1d6   : > { %2047 = vmatpush.bf16.msrb.mxu3 %v3941_v36 }
 0x1d9   : > { %v1650_v48 = vpop.f32.mrf.mxu2  ;;  %2048 = vmatmul.bf16.vlgmr.msrb.gmra.mxu3 %v4035_v37  ;;  %v1699_v47 = vpop.f32.mrf.mxu3 }
 0x1da   : > { %v1651_v21 = vadd.f32 %v1650_v48, %v3708_v53  ;;  %v4108_v46 = vpop.f32.mrf.mxu0  ;;  %v4110_v63 = vpop.f32.mrf.mxu1 }
 0x1dc   : > { %v4112_v40 = vadd.f32 %v1699_v47, %v1651_v21 }
 0x1de   : > { %4534 = vst [vmem:[#allocation9_spill] sm:$0xff] %v4112_v40 }
 0x1e1   : > { %v4114_v52 = vpop.f32.mrf.mxu2  ;;  %v4121_v36 = vpop.f32.mrf.mxu3 }
 0x1e2   : > { %4536 = vst [vmem:[#allocation13_spill] sm:$0xff] %v4121_v36  ;;  %v1557_v43 = vpop.f32.mrf.mxu0  ;;  %2024 = vmatmul.bf16.gmra.mxu2 %v4066_v35  ;;  %v1606_v9 = vpop.f32.mrf.mxu1 }
 0x1e3   : > { %v1558_v53 = vadd.f32 %v1557_v43, %v4509_v1 }
 0x1e4   : > { %1976 = vmatmul.bf16.gmra.mxu0 %v4119_v22 }
 0x1e5   : > { %v4125_v2 = vadd.f32 %v1606_v9, %v1558_v53  ;;  %2005 = vmatmul.bf16.gmra.mxu1 %v4119_v22 }
 0x1e9   : > { %v1655_v10 = vpop.f32.mrf.mxu2  ;;  %2053 = vmatmul.bf16.gmra.mxu3 %v4066_v35  ;;  %v1704_v11 = vpop.f32.mrf.mxu3 }
 0x1ea   : > { %v1656_v32 = vadd.f32 %v1655_v10, %v4509_v1  ;;  %v4131_v50 = vpop.f32.mrf.mxu0  ;;  %v4133_v41 = vpop.f32.mrf.mxu1 }
 0x1ec   : > { %v4135_v14 = vadd.f32 %v1704_v11, %v1656_v32 }
 0x1ee   : > { %4537 = vst [vmem:[#allocation14_spill] sm:$0xff] %v4135_v14 }
 0x1f1   : > { %v4137_v5 = vpop.f32.mrf.mxu2  ;;  %v4139_v4 = vpop.f32.mrf.mxu3 }
 0x1f2   : > { %v1562_v56 = vpop.f32.mrf.mxu0  ;;  %2029 = vmatmul.bf16.gmra.mxu2 %v4094_v33  ;;  %v1611_v34 = vpop.f32.mrf.mxu1 }
 0x1f3   : > { %v1563_v7 = vadd.f32 %v1562_v56, %v4513_v27 }
 0x1f5   : > { %v4143_v51 = vadd.f32 %v1611_v34, %v1563_v7 }
 0x1f9   : > { %v1660_v1 = vpop.f32.mrf.mxu2  ;;  %2058 = vmatmul.bf16.gmra.mxu3 %v4094_v33  ;;  %v1709_v18 = vpop.f32.mrf.mxu3 }
 0x1fa   : > { %v1661_v44 = vadd.f32 %v1660_v1, %v4513_v27  ;;  %v1564_v6 = vpop.f32.mrf.mxu0  ;;  %v1613_v39 = vpop.f32.mrf.mxu1 }
 0x1fb   : > { %v1565_v36 = vadd.f32 %v1564_v6, %v3698_v38 }
 0x1fc   : > { %v4147_v54 = vadd.f32 %v1709_v18, %v1661_v44 }
 0x201   : > { %v4149_v31 = vpop.f32.mrf.mxu2  ;;  %v4151_v28 = vpop.f32.mrf.mxu3 }
 0x202   : > { %v1567_v29 = vpop.f32.mrf.mxu0  ;;  %2034 = vmatmul.bf16.gmra.mxu2 %v4119_v22  ;;  %v1616_v49 = vpop.f32.mrf.mxu1 }
 0x203   : > { %v1568_v13 = vadd.f32 %v1567_v29, %v3612_v24 }
 0x209   : > { %v1665_v60 = vpop.f32.mrf.mxu2  ;;  %2063 = vmatmul.bf16.gmra.mxu3 %v4119_v22  ;;  %v4155_v57 = vpop.f32.mrf.mxu3 }
 0x20a   : > { %v1569_v48 = vpop.f32.mrf.mxu0  ;;  %v1618_v27 = vpop.f32.mrf.mxu1 }
 0x20b   : > { %v1570_v45 = vadd.f32 %v1569_v48, %v3650_v3 }
 0x211   : > { %v1667_v21 = vpop.f32.mrf.mxu2  ;;  %v1716_v47 = vpop.f32.mrf.mxu3 }
 0x212   : > { %v1572_v43 = vpop.f32.mrf.mxu0  ;;  %v1621_v53 = vpop.f32.mrf.mxu1 }
 0x213   : > { %v1573_v37 = vadd.f32 %v1572_v43, %v3677_v25  ;;  %v1619_v43 = vadd.f32 %v1618_v27, %v1570_v45 }
 0x219   : > { %v1670_v9 = vpop.f32.mrf.mxu2  ;;  %v1719_v10 = vpop.f32.mrf.mxu3 }
 0x21a   : > { %v1574_v32 = vpop.f32.mrf.mxu0  ;;  %v1623_v11 = vpop.f32.mrf.mxu1  ;;  %v1671_v26 = vadd.f32 %v1670_v9, %v3677_v25  ;;  %v1799_v25 = vmax.f32 %v1619_v43, 0.0  ;;  %v1782_v43 = vmax.f32 %v4147_v54, 0.0  ;;  %v4542_v54 = vld [vmem:[#allocation14_spill] sm:$0xff] }
 0x21b   : > { %v1575_v18 = vadd.f32 %v1574_v32, %v3691_v30 }
 0x21d   : > { %v1624_v40 = vadd.f32 %v1623_v11, %v1575_v18  ;;  %v4538_v18 = vld [vmem:[#allocation17_spill] sm:$0xff] }
 0x221   : > { %v1672_v56 = vpop.f32.mrf.mxu2  ;;  %v1721_v7 = vpop.f32.mrf.mxu3 }
 0x222   : > { %v1577_v34 = vpop.f32.mrf.mxu0  ;;  %v1626_v1 = vpop.f32.mrf.mxu1  ;;  %v1673_v23 = vadd.f32 %v1672_v56, %v3691_v30  ;;  %v1668_v30 = vadd.f32 %v1667_v21, %v3650_v3  ;;  %v1555_v21 = vadd.f32 %v4108_v46, %v4508_v8 }
 0x223   : > { %v1578_v44 = vadd.f32 %v1577_v34, %v3603_v12  ;;  %v1622_v34 = vadd.f32 %v1621_v53, %v1573_v37  ;;  %v1781_v53 = vmax.f32 %v4143_v51, 0.0  ;;  %v1769_v51 = vmax.f32 %v4125_v2, 0.0 }
 0x224   : > { %v1717_v27 = vadd.f32 %v1716_v47, %v1668_v30  ;;  %v1550_v47 = vadd.f32 %v4080_v55, %v3720_v16  ;;  %v1757_v2 = vmax.f32 %v4101_v17, 0.0  ;;  %v4543_v30 = vld [vmem:[#allocation11_spill] sm:$0xff] }
 0x225   : > { %v1627_v59 = vadd.f32 %v1626_v1, %v1578_v44  ;;  %v1811_v1 = vmax.f32 %v1624_v40, 0.0  ;;  %v1560_v40 = vadd.f32 %v4131_v50, %v4512_v58  ;;  %v4544_v17 = vld [vmem:[#allocation3_spill] sm:$0xff] }
 0x226   : > { %v1599_v55 = vadd.f32 %v4082_v42, %v1550_v47  ;;  %v4541_v42 = vld [vmem:[#allocation16_spill] sm:$0xff] }
 0x227   : > { %v1817_v14 = vmax.f32 %v1627_v59, 0.0 }
 0x229   : > { %v1675_v22 = vpop.f32.mrf.mxu2  ;;  %v1724_v33 = vpop.f32.mrf.mxu3 }
 0x22a   : > { %v1579_v35 = vpop.f32.mrf.mxu0  ;;  %v1628_v20 = vpop.f32.mrf.mxu1  ;;  %v1676_v19 = vadd.f32 %v1675_v22, %v3603_v12  ;;  %v1617_v12 = vadd.f32 %v1616_v49, %v1568_v13  ;;  %v1805_v22 = vmax.f32 %v1622_v34, 0.0  ;;  %v1663_v49 = vadd.f32 %v4149_v31, %v3698_v38 }
 0x22b   : > { %v1580_v0 = vadd.f32 %v1579_v35, %v3641_v61  ;;  %v1658_v38 = vadd.f32 %v4137_v5, %v4512_v58  ;;  %v1800_v31 = vmax.f32 %v1717_v27, 0.0  ;;  %v1545_v34 = vadd.f32 %v4053_v15, %v4538_v18 }
 0x22c   : > { %v1725_v48 = vadd.f32 %v1724_v33, %v1676_v19  ;;  %v1865_v19 = vpack.c.bf16 %v1811_v1, %v1805_v22  ;;  %v1720_v33 = vadd.f32 %v1719_v10, %v1671_v26  ;;  %v1793_v29 = vmax.f32 %v1617_v12, 0.0 }
 0x22d   : > { %v1629_v62 = vadd.f32 %v1628_v20, %v1580_v0  ;;  %v1712_v46 = vadd.f32 %v4151_v28, %v1663_v49  ;;  %v1707_v58 = vadd.f32 %v4139_v4, %v1658_v38  ;;  %v4540_v4 = vld [vmem:[#allocation13_spill] sm:$0xff]  ;;  %v1751_v12 = vmax.f32 %v1599_v55, 0.0  ;;  %v4550_v38 = vld [vmem:[#allocation12_spill] sm:$0xff]  ;;  %v4233_v55 = vpop.permute.xlu0 %1911 }
 0x22e   : > { %v1818_v6 = vmax.f32 %v1725_v48, 0.0  ;;  %v1806_v26 = vmax.f32 %v1720_v33, 0.0  ;;  %v4546_v33 = vld [vmem:[#allocation9_spill] sm:$0xff] }
 0x22f   : > { %v1823_v32 = vmax.f32 %v1629_v62, 0.0  ;;  %v1722_v62 = vadd.f32 %v1721_v7, %v1673_v23  ;;  %v1653_v7 = vadd.f32 %v4114_v52, %v4508_v8  ;;  %v1788_v5 = vmax.f32 %v1712_v46, 0.0  ;;  %v4539_v8 = vld [vmem:[#allocation6_spill] sm:$0xff] }
 0x230   : > { %v1648_v52 = vadd.f32 %v4539_v8, %v3720_v16  ;;  %v1776_v15 = vmax.f32 %v1707_v58, 0.0  ;;  %v1734_v46 = vmax.f32 %v4550_v38, 0.0  ;;  %v4228_v58 = vpop.permute.xlu2 %1926 }
 0x231   : > { %v1871_v44 = vpack.c.bf16 %v1823_v32, %v1817_v14  ;;  %v1677_v35 = vpop.f32.mrf.mxu2  ;;  %v1726_v37 = vpop.f32.mrf.mxu3  ;;  %v1614_v14 = vadd.f32 %v1613_v39, %v1565_v36  ;;  %v1812_v3 = vmax.f32 %v1722_v62, 0.0  ;;  %v1609_v36 = vadd.f32 %v4133_v41, %v1560_v40  ;;  %v4545_v40 = vld [vmem:[#allocation8_spill] sm:$0xff] }
 0x232   : > { %v1678_v20 = vadd.f32 %v1677_v35, %v3641_v61  ;;  %v4168_v0 = vpop.f32.mrf.mxu0  ;;  %v4170_v59 = vpop.f32.mrf.mxu1  ;;  %v1666_v61 = vadd.f32 %v1665_v60, %v3612_v24  ;;  %v1859_v39 = vpack.c.bf16 %v1799_v25, %v1793_v29  ;;  %v1702_v35 = vadd.f32 %v4540_v4, %v1653_v7  ;;  %v4547_v29 = vld [vmem:[#allocation18_spill] sm:$0xff] }
 0x233   : > { %2069 = vmatpush.bf16.msra.mxu0 %v1871_v44  ;;  %v1787_v50 = vmax.f32 %v1614_v14, 0.0  ;;  %v1866_v41 = vpack.c.bf16 %v1812_v3, %v1806_v26  ;;  %v1775_v10 = vmax.f32 %v1609_v36, 0.0  ;;  %v1854_v48 = vpack.c.bf16 %v1788_v5, %v1782_v43  ;;  %v4548_v3 = vld [vmem:[#allocation15_spill] sm:$0xff]  ;;  %v4230_v5 = vpop.permute.xlu1 %1921 }
 0x234   : > { %v1727_v45 = vadd.f32 %v1726_v37, %v1678_v20  ;;  %v1715_v24 = vadd.f32 %v4155_v57, %v1666_v61  ;;  %v1604_v57 = vadd.f32 %v4110_v63, %v1555_v21  ;;  %v1594_v20 = vadd.f32 %v4541_v42, %v1545_v34 }
 0x235   : > { %v1853_v11 = vpack.c.bf16 %v1787_v50, %v1781_v53  ;;  %v1847_v32 = vpack.c.bf16 %v1775_v10, %v1769_v51  ;;  %v1770_v37 = vmax.f32 %v4542_v54, 0.0  ;;  %v1745_v62 = vmax.f32 %v4543_v30, 0.0 }
 0x236   : > { %v1824_v13 = vmax.f32 %v1727_v45, 0.0  ;;  %v1794_v56 = vmax.f32 %v1715_v24, 0.0  ;;  %v1763_v63 = vmax.f32 %v1604_v57, 0.0  ;;  %v1643_v45 = vadd.f32 %v4544_v17, %v4538_v18  ;;  %v4552_v18 = vld [vmem:[#allocation4_spill] sm:$0xff] }
 0x237   : > { %2070 = vmatpush.bf16.msra.mxu0 %v1865_v19  ;;  %v1697_v14 = vadd.f32 %v4545_v40, %v1648_v52  ;;  %v1764_v16 = vmax.f32 %v1702_v35, 0.0  ;;  %v1848_v25 = vpack.c.bf16 %v1776_v15, %v1770_v37  ;;  %v1739_v19 = vmax.f32 %v1594_v20, 0.0 }
 0x238   : > { %v1872_v23 = vpack.c.bf16 %v1824_v13, %v1818_v6  ;;  %v1860_v28 = vpack.c.bf16 %v1800_v31, %v1794_v56  ;;  %v1841_v22 = vpack.c.bf16 %v1763_v63, %v1757_v2  ;;  %v1835_v61 = vpack.c.bf16 %v1751_v12, %v1745_v62  ;;  %v4239_v43 = vpop.permute.xlu2 %1901  ;;  %v4255_v62 = vpop.permute.xlu0 %1906 }
 0x239   : > { %v1758_v6 = vmax.f32 %v4546_v33, 0.0  ;;  %v1733_v49 = vmax.f32 %v4547_v29, 0.0  ;;  %v1752_v21 = vmax.f32 %v1697_v14, 0.0 }
 0x23a   : > { %2098 = vmatpush.bf16.msra.mxu1 %v1872_v23  ;;  %v4182_v60 = vpop.f32.mrf.mxu0  ;;  %v4185_v9 = vpop.f32.mrf.mxu1  ;;  %v1692_v23 = vadd.f32 %v4548_v3, %v1643_v45 }
 0x23b   : > { %2071 = vmatpush.bf16.msra.mxu0 %v1859_v39  ;;  %v1842_v36 = vpack.c.bf16 %v1764_v16, %v1758_v6  ;;  %v1829_v50 = vpack.c.bf16 %v1739_v19, %v1733_v49  ;;  %v4549_v39 = vld [vmem:[#allocation5_spill] sm:$0xff]  ;;  %v4243_v8 = vpop.permute.xlu1 %1916 }
 0x23c   : > { %v1746_v24 = vmax.f32 %v4549_v39, 0.0  ;;  %v1740_v26 = vmax.f32 %v1692_v23, 0.0 }
 0x23e   : > { %2099 = vmatpush.bf16.msra.mxu1 %v1866_v41  ;;  %v1836_v53 = vpack.c.bf16 %v1752_v21, %v1746_v24  ;;  %v4551_v41 = vld [vmem:[#allocation2_spill] sm:$0xff]  ;;  %v1830_v57 = vpack.c.bf16 %v1740_v26, %v1734_v46  ;;  %v4553_v21 = vld [vmem:[#allocation7_spill] sm:$0xff] }
 0x23f   : > { %2072 = vmatpush.bf16.msra.mxu0 %v1853_v11 }
 0x240   : > { %v4262_v49 = vpop.permute.xlu2 %1896 }
 0x242   : > { %2100 = vmatpush.bf16.msra.mxu1 %v1860_v28  ;;  %v4201_v1 = vpop.f32.mrf.mxu0  ;;  %v4204_v44 = vpop.f32.mrf.mxu1 }
 0x243   : > { %2073 = vmatpush.bf16.msra.mxu0 %v1847_v32  ;;  %v1968_v6 = vadd.f32 %v4201_v1, %v4239_v43  ;;  %v1997_v3 = vadd.f32 %v4204_v44, %v4239_v43  ;;  %v1994_v1 = vadd.f32 %v4185_v9, %v4262_v49 }
 0x246   : > { %2101 = vmatpush.bf16.msra.mxu1 %v1854_v48 }
 0x247   : > { %2074 = vmatpush.bf16.msra.mxu0 %v1841_v22 }
 0x24a   : > { %2102 = vmatpush.bf16.msra.mxu1 %v1848_v25  ;;  %v1969_v13 = vpop.f32.mrf.mxu0  ;;  %v1998_v27 = vpop.f32.mrf.mxu1 }
 0x24b   : > { %2075 = vmatpush.bf16.msra.mxu0 %v1835_v61  ;;  %v1970_v14 = vadd.f32 %v1969_v13, %v4255_v62  ;;  %v1999_v19 = vadd.f32 %v1998_v27, %v4255_v62  ;;  %v1965_v13 = vadd.f32 %v4182_v60, %v4262_v49  ;;  %v2140_v60 = vmax.f32 %v1997_v3, 0.0 }
 0x24d   : > { %v2145_v27 = vmax.f32 %v1970_v14, 0.0  ;;  %v2146_v39 = vmax.f32 %v1999_v19, 0.0 }
 0x24e   : > { %2103 = vmatpush.bf16.msra.mxu1 %v1842_v36 }
 0x24f   : > { %2076 = vmatpush.bf16.msra.mxu0 %v1829_v50  ;;  %v4269_v50 = vpop.permute.xlu1 %1891 }
 0x250   : > { %v1963_v44 = vadd.f32 %v4168_v0, %v4269_v50  ;;  %v1992_v46 = vadd.f32 %v4170_v59, %v4269_v50 }
 0x252   : > { %2104 = vmatpush.bf16.msra.mxu1 %v1836_v53  ;;  %v1972_v31 = vpop.f32.mrf.mxu0  ;;  %2077 = vmatmul.bf16.vlgmr.msra.gmra.mxu0 %v4551_v41  ;;  %v2001_v47 = vpop.f32.mrf.mxu1  ;;  %v2139_v53 = vmax.f32 %v1968_v6, 0.0  ;;  %v2128_v9 = vmax.f32 %v1992_v46, 0.0 }
 0x253   : > { %v1973_v22 = vadd.f32 %v1972_v31, %v4233_v55  ;;  %v2002_v17 = vadd.f32 %v2001_v47, %v4233_v55  ;;  %v2133_v31 = vmax.f32 %v1965_v13, 0.0  ;;  %v2134_v47 = vmax.f32 %v1994_v1, 0.0 }
 0x255   : > { %v4221_v10 = vpop.f32.mrf.mxu2  ;;  %v2151_v29 = vmax.f32 %v1973_v22, 0.0  ;;  %v2152_v23 = vmax.f32 %v2002_v17, 0.0  ;;  %v2176_v0 = vpack.c.bf16 %v2134_v47, %v2128_v9 }
 0x256   : > { %2105 = vmatpush.bf16.msra.mxu1 %v1830_v57  ;;  %v2182_v57 = vpack.c.bf16 %v2146_v39, %v2140_v60  ;;  %v2021_v13 = vadd.f32 %v4221_v10, %v4269_v50 }
 0x259   : > { %2106 = vmatmul.bf16.vlgmr.msra.gmra.mxu1 %v4551_v41  ;;  %v2181_v41 = vpack.c.bf16 %v2145_v27, %v2139_v53  ;;  %v2129_v53 = vmax.f32 %v2021_v13, 0.0  ;;  %v4342_v13 = vpop.permute.xlu0 %2219 }
 0x25a   : > { %v1974_v11 = vpop.f32.mrf.mxu0  ;;  %v2003_v56 = vpop.f32.mrf.mxu1 }
 0x25b   : > { %v1975_v35 = vadd.f32 %v1974_v11, %v4243_v8  ;;  %v2004_v42 = vadd.f32 %v2003_v56, %v4243_v8  ;;  %v2127_v11 = vmax.f32 %v1963_v44, 0.0 }
 0x25c   : > { %v4224_v51 = vpop.f32.mrf.mxu3 }
 0x25d   : > { %v4226_v7 = vpop.f32.mrf.mxu2  ;;  %v2157_v16 = vmax.f32 %v1975_v35, 0.0  ;;  %v2158_v61 = vmax.f32 %v2004_v42, 0.0  ;;  %v2175_v56 = vpack.c.bf16 %v2133_v31, %v2127_v11 }
 0x25e   : > { %v2023_v6 = vadd.f32 %v4226_v7, %v4262_v49 }
 0x25f   : > { %v2187_v36 = vpack.c.bf16 %v2157_v16, %v2151_v29  ;;  %v2188_v24 = vpack.c.bf16 %v2158_v61, %v2152_v23 }
 0x260   : > { %v2135_v39 = vmax.f32 %v2023_v6, 0.0 }
 0x262   : > { %v1977_v28 = vpop.f32.mrf.mxu0  ;;  %2082 = vmatmul.bf16.gmra.mxu0 %v4552_v18  ;;  %v2006_v34 = vpop.f32.mrf.mxu1  ;;  %v2177_v60 = vpack.c.bf16 %v2135_v39, %v2129_v53 }
 0x263   : > { %v1978_v2 = vadd.f32 %v1977_v28, %v4230_v5  ;;  %v2007_v52 = vadd.f32 %v2006_v34, %v4230_v5  ;;  %v4554_v34 = vld [vmem:[#allocation10_spill] sm:$0xff] }
 0x264   : > { %v4235_v63 = vpop.f32.mrf.mxu3 }
 0x265   : > { %v4237_v32 = vpop.f32.mrf.mxu2  ;;  %v2163_v54 = vmax.f32 %v1978_v2, 0.0  ;;  %v2164_v45 = vmax.f32 %v2007_v52, 0.0 }
 0x266   : > { %v2026_v16 = vadd.f32 %v4237_v32, %v4239_v43 }
 0x268   : > { %v2141_v32 = vmax.f32 %v2026_v16, 0.0 }
 0x269   : > { %2111 = vmatmul.bf16.gmra.mxu1 %v4552_v18  ;;  %v4281_v18 = vld [vmem:[%s4444_s5] sm:$0xff] }
 0x26a   : > { %v1979_v4 = vpop.f32.mrf.mxu0  ;;  %v2008_v48 = vpop.f32.mrf.mxu1 }
 0x26b   : > { %v1980_v15 = vadd.f32 %v1979_v4, %v4228_v58  ;;  %v2009_v20 = vadd.f32 %v2008_v48, %v4228_v58 }
 0x26c   : > { %v4250_v12 = vpop.f32.mrf.mxu3 }
 0x26d   : > { %v2169_v37 = vmax.f32 %v1980_v15, 0.0  ;;  %v4253_v30 = vpop.f32.mrf.mxu2  ;;  %v2170_v40 = vmax.f32 %v2009_v20, 0.0  ;;  %v4293_v15 = vld [vmem:[%s4444_s5 + $0x8] sm:$0xff]  ;;  %v2055_v7 = vadd.f32 %v4250_v12, %v4239_v43 }
 0x26e   : > { %v2028_v17 = vadd.f32 %v4253_v30, %v4255_v62 }
 0x26f   : > { %v2193_v25 = vpack.c.bf16 %v2169_v37, %v2163_v54  ;;  %v2194_v33 = vpack.c.bf16 %v2170_v40, %v2164_v45  ;;  %v2142_v31 = vmax.f32 %v2055_v7, 0.0 }
 0x270   : > { %v2147_v29 = vmax.f32 %v2028_v17, 0.0 }
 0x271   : > { %2248 = vmatpush.bf16.msra.mxu2 %v2193_v25  ;;  %2267 = vmatpush.bf16.msra.mxu3 %v2194_v33 }
 0x272   : > { %2087 = vmatmul.bf16.gmra.mxu0 %v4553_v21 }
 0x274   : > { %v2056_v26 = vpop.f32.mrf.mxu3 }
 0x275   : > { %v2030_v38 = vpop.f32.mrf.mxu2  ;;  %2249 = vmatpush.bf16.msra.mxu2 %v2187_v36  ;;  %2268 = vmatpush.bf16.msra.mxu3 %v2188_v24  ;;  %v2057_v27 = vadd.f32 %v2056_v26, %v4255_v62  ;;  %v2183_v24 = vpack.c.bf16 %v2147_v29, %v2141_v32  ;;  %v2050_v26 = vadd.f32 %v4224_v51, %v4269_v50 }
 0x276   : > { %v2031_v22 = vadd.f32 %v2030_v38, %v4233_v55  ;;  %v2052_v38 = vadd.f32 %v4235_v63, %v4262_v49 }
 0x277   : > { %v2148_v46 = vmax.f32 %v2057_v27, 0.0 }
 0x278   : > { %v2153_v25 = vmax.f32 %v2031_v22, 0.0 }
 0x279   : > { %2116 = vmatmul.bf16.gmra.mxu1 %v4553_v21  ;;  %2250 = vmatpush.bf16.msra.mxu2 %v2181_v41  ;;  %v2136_v41 = vmax.f32 %v2052_v38, 0.0  ;;  %v2184_v47 = vpack.c.bf16 %v2148_v46, %v2142_v31 }
 0x27a   : > { %2269 = vmatpush.bf16.msra.mxu3 %v2182_v57  ;;  %v2130_v57 = vmax.f32 %v2050_v26, 0.0 }
 0x27c   : > { %v2059_v28 = vpop.f32.mrf.mxu3  ;;  %v2178_v12 = vpack.c.bf16 %v2136_v41, %v2130_v57 }
 0x27d   : > { %v2032_v59 = vpop.f32.mrf.mxu2  ;;  %2251 = vmatpush.bf16.msra.mxu2 %v2175_v56  ;;  %v2060_v30 = vadd.f32 %v2059_v28, %v4233_v55 }
 0x27e   : > { %2270 = vmatpush.bf16.msra.mxu3 %v2176_v0  ;;  %v2033_v42 = vadd.f32 %v2032_v59, %v4243_v8 }
 0x27f   : > { %v2154_v44 = vmax.f32 %v2060_v30, 0.0 }
 0x280   : > { %3068 = vmatmul.msk.bf16.vlgmr.msra.gmra.mxu2 %vm2237_vm0, %v4281_v18  ;;  %v2159_v45 = vmax.f32 %v2033_v42, 0.0 }
 0x281   : > { %3070 = vmatmul.msk.bf16.vlgmr.msra.gmra.mxu3 %vm2237_vm0, %v4281_v18 }
 0x282   : > { %2092 = vmatmul.bf16.gmra.mxu0 %v4554_v34  ;;  %v2189_v3 = vpack.c.bf16 %v2159_v45, %v2153_v25 }
 0x284   : > { %v2061_v2 = vpop.f32.mrf.mxu3 }
 0x285   : > { %v2035_v52 = vpop.f32.mrf.mxu2  ;;  %v2062_v61 = vadd.f32 %v2061_v2, %v4243_v8 }
 0x286   : > { %v2036_v4 = vadd.f32 %v2035_v52, %v4230_v5 }
 0x287   : > { %v2160_v36 = vmax.f32 %v2062_v61, 0.0 }
 0x288   : > { %v2165_v54 = vmax.f32 %v2036_v4, 0.0 }
 0x289   : > { %2121 = vmatmul.bf16.gmra.mxu1 %v4554_v34  ;;  %v2190_v10 = vpack.c.bf16 %v2160_v36, %v2154_v44 }
 0x28c   : > { %v2064_v35 = vpop.f32.mrf.mxu3 }
 0x28d   : > { %v2037_v48 = vpop.f32.mrf.mxu2  ;;  %v2065_v14 = vadd.f32 %v2064_v35, %v4230_v5 }
 0x28e   : > { %v2038_v20 = vadd.f32 %v2037_v48, %v4228_v58 }
 0x28f   : > { %v2166_v23 = vmax.f32 %v2065_v14, 0.0 }
 0x290   : > { %v2171_v37 = vmax.f32 %v2038_v20, 0.0  ;;  %3069 = vmatmul.msk.bf16.gmra.mxu2 %vm2237_vm0, %v4293_v15 }
 0x291   : > { %3071 = vmatmul.msk.bf16.gmra.mxu3 %vm2237_vm0, %v4293_v15 }
 0x292   : > { %v2195_v40 = vpack.c.bf16 %v2171_v37, %v2165_v54 }
 0x294   : > { %v2066_v19 = vpop.f32.mrf.mxu3  ;;  %2286 = vmatpush.bf16.msrb.mxu2 %v2195_v40 }
 0x295   : > { %v2067_v33 = vadd.f32 %v2066_v19, %v4228_v58 }
 0x297   : > { %v2172_v21 = vmax.f32 %v2067_v33, 0.0 }
 0x298   : > { %2287 = vmatpush.bf16.msrb.mxu2 %v2189_v3 }
 0x299   : > { %v2196_v1 = vpack.c.bf16 %v2172_v21, %v2166_v23 }
 0x29b   : > { %2305 = vmatpush.bf16.msrb.mxu3 %v2196_v1 }
 0x29c   : > { %2288 = vmatpush.bf16.msrb.mxu2 %v2183_v24 }
 0x29f   : > { %2306 = vmatpush.bf16.msrb.mxu3 %v2190_v10 }
 0x2a0   : > { %2289 = vmatpush.bf16.msrb.mxu2 %v2177_v60 }
 0x2a3   : > { %2307 = vmatpush.bf16.msrb.mxu3 %v2184_v47  ;;  %3072 = vmatmul.msk.bf16.vlgmr.msrb.gmra.mxu2 %vm2237_vm0, %v4281_v18 }
 0x2a7   : > { %2308 = vmatpush.bf16.msrb.mxu3 %v2178_v12 }
 0x2aa   : > { %3074 = vmatmul.msk.bf16.vlgmr.msrb.gmra.mxu3 %vm2237_vm0, %v4281_v18 }
 0x2b3   : > { %3073 = vmatmul.msk.bf16.gmra.mxu2 %vm2237_vm0, %v4293_v15 }
 0x2ba   : > { %3075 = vmatmul.msk.bf16.gmra.mxu3 %vm2237_vm0, %v4293_v15 }
 0x2cf   : > { %v2078_v51 = vpop.f32.mrf.mxu0 }
 0x2d6   : > { %v2107_v63 = vpop.f32.mrf.mxu1 }
 0x2d7   : > { %v2080_v11 = vpop.f32.mrf.mxu0  ;;  %v2108_v12 = vadd.f32 %v2107_v63, %v4269_v50 }
 0x2d8   : > { %v2081_v32 = vadd.f32 %v2080_v11, %v4262_v49 }
 0x2d9   : > { %v2132_v63 = vmax.f32 %v2108_v12, 0.0 }
 0x2de   : > { %v2109_v9 = vpop.f32.mrf.mxu1 }
 0x2df   : > { %v2083_v56 = vpop.f32.mrf.mxu0 }
 0x2e0   : > { %v2084_v29 = vadd.f32 %v2083_v56, %v4239_v43  ;;  %v4354_v56 = vpop.permute.xlu1 %2224 }
 0x2e2   : > { %v2143_v7 = vmax.f32 %v2084_v29, 0.0 }
 0x2e6   : > { %v2112_v0 = vpop.f32.mrf.mxu1 }
 0x2e7   : > { %v2085_v28 = vpop.f32.mrf.mxu0  ;;  %v2113_v60 = vadd.f32 %v2112_v0, %v4239_v43 }
 0x2e8   : > { %v2086_v25 = vadd.f32 %v2085_v28, %v4255_v62 }
 0x2ea   : > { %v2149_v27 = vmax.f32 %v2086_v25, 0.0 }
 0x2ec   : > { %v2185_v46 = vpack.c.bf16 %v2149_v27, %v2143_v7 }
 0x2ee   : > { %v2114_v59 = vpop.f32.mrf.mxu1 }
 0x2ef   : > { %v2088_v34 = vpop.f32.mrf.mxu0  ;;  %v2115_v44 = vadd.f32 %v2114_v59, %v4255_v62  ;;  %v2144_v62 = vmax.f32 %v2113_v60, 0.0 }
 0x2f0   : > { %v2089_v45 = vadd.f32 %v2088_v34, %v4233_v55 }
 0x2f1   : > { %v2150_v41 = vmax.f32 %v2115_v44, 0.0 }
 0x2f2   : > { %v2155_v3 = vmax.f32 %v2089_v45, 0.0 }
 0x2f3   : > { %v2186_v0 = vpack.c.bf16 %v2150_v41, %v2144_v62 }
 0x2f6   : > { %v2117_v2 = vpop.f32.mrf.mxu1 }
 0x2f7   : > { %v2090_v52 = vpop.f32.mrf.mxu0  ;;  %v2118_v1 = vadd.f32 %v2117_v2, %v4233_v55  ;;  %v2110_v55 = vadd.f32 %v2109_v9, %v4262_v49 }
 0x2f8   : > { %v2091_v37 = vadd.f32 %v2090_v52, %v4243_v8 }
 0x2f9   : > { %v2156_v26 = vmax.f32 %v2118_v1, 0.0  ;;  %v2138_v43 = vmax.f32 %v2110_v55, 0.0 }
 0x2fa   : > { %v2161_v19 = vmax.f32 %v2091_v37, 0.0 }
 0x2fc   : > { %v2191_v36 = vpack.c.bf16 %v2161_v19, %v2155_v3 }
 0x2fe   : > { %v2119_v4 = vpop.f32.mrf.mxu1 }
 0x2ff   : > { %v2093_v35 = vpop.f32.mrf.mxu0  ;;  %v2120_v23 = vadd.f32 %v2119_v4, %v4243_v8 }
 0x300   : > { %v2094_v20 = vadd.f32 %v2093_v35, %v4230_v5 }
 0x301   : > { %v2162_v53 = vmax.f32 %v2120_v23, 0.0 }
 0x302   : > { %v2167_v40 = vmax.f32 %v2094_v20, 0.0 }
 0x303   : > { %v4329_v48 = vpop.f32.mrf.mxu2  ;;  %v2192_v47 = vpack.c.bf16 %v2162_v53, %v2156_v26 }
 0x304   : > { %v4331_v42 = vpop.f32.mrf.mxu3 }
 0x306   : > { %v2122_v22 = vpop.f32.mrf.mxu1 }
 0x307   : > { %v2095_v54 = vpop.f32.mrf.mxu0  ;;  %v2123_v6 = vadd.f32 %v2122_v22, %v4230_v5  ;;  %v2079_v5 = vadd.f32 %v2078_v51, %v4269_v50  ;;  %v4351_v51 = vpop.permute.xlu0 %2214  ;;  %v2180_v22 = vpack.c.bf16 %v2138_v43, %v2132_v63 }
 0x308   : > { %v2096_v17 = vadd.f32 %v2095_v54, %v4228_v58  ;;  %v4359_v50 = vpop.permute.xlu2 %2209 }
 0x309   : > { %v2168_v39 = vmax.f32 %v2123_v6, 0.0  ;;  %v2131_v31 = vmax.f32 %v2079_v5, 0.0  ;;  %v2254_v4 = vadd.f32 %v4329_v48, %v4359_v50  ;;  %v2273_v54 = vadd.f32 %v4331_v42, %v4359_v50  ;;  %v4374_v42 = vld [vmem:[%s4446_s7] sm:$0x7] }
 0x30a   : > { %v2173_v14 = vmax.f32 %v2096_v17, 0.0 }
 0x30b   : > { %v2255_v16 = vpop.f32.mrf.mxu2  ;;  %v2358_v25 = vmax.f32 %v2254_v4, 0.0  ;;  %v2359_v19 = vmax.f32 %v2273_v54, 0.0 }
 0x30c   : > { %v2197_v61 = vpack.c.bf16 %v2173_v14, %v2167_v40  ;;  %v2274_v33 = vpop.f32.mrf.mxu3  ;;  %v2256_v49 = vadd.f32 %v2255_v16, %v4351_v51 }
 0x30d   : > { %v2275_v2 = vadd.f32 %v2274_v33, %v4351_v51 }
 0x30e   : > { %v2124_v30 = vpop.f32.mrf.mxu1  ;;  %2324 = vmatpush.bf16.msrb.mxu0 %v2197_v61  ;;  %v2364_v45 = vmax.f32 %v2256_v49, 0.0 }
 0x30f   : > { %v2125_v21 = vadd.f32 %v2124_v30, %v4228_v58  ;;  %v2137_v58 = vmax.f32 %v2081_v32, 0.0  ;;  %v2365_v14 = vmax.f32 %v2275_v2, 0.0 }
 0x310   : > { %v2382_v61 = vpack.c.bf16 %v2364_v45, %v2358_v25 }
 0x311   : > { %v2174_v24 = vmax.f32 %v2125_v21, 0.0  ;;  %v2179_v57 = vpack.c.bf16 %v2137_v58, %v2131_v31  ;;  %v2383_v48 = vpack.c.bf16 %v2365_v14, %v2359_v19 }
 0x312   : > { %2325 = vmatpush.bf16.msrb.mxu0 %v2191_v36 }
 0x313   : > { %v2198_v8 = vpack.c.bf16 %v2174_v24, %v2168_v39  ;;  %v2258_v38 = vpop.f32.mrf.mxu2 }
 0x314   : > { %v2277_v10 = vpop.f32.mrf.mxu3  ;;  %v2259_v11 = vadd.f32 %v2258_v38, %v4342_v13 }
 0x315   : > { %2343 = vmatpush.bf16.msrb.mxu1 %v2198_v8  ;;  %v2278_v28 = vadd.f32 %v2277_v10, %v4342_v13 }
 0x316   : > { %2326 = vmatpush.bf16.msrb.mxu0 %v2185_v46  ;;  %v2370_v35 = vmax.f32 %v2259_v11, 0.0  ;;  %v2399_v11 = vpop.permute.xlu1 %2398 }
 0x317   : > { %v2371_v37 = vmax.f32 %v2278_v28, 0.0 }
 0x319   : > { %2344 = vmatpush.bf16.msrb.mxu1 %v2192_v47 }
 0x31a   : > { %2327 = vmatpush.bf16.msrb.mxu0 %v2179_v57 }
 0x31b   : > { %v2260_v59 = vpop.f32.mrf.mxu2 }
 0x31c   : > { %v2261_v9 = vadd.f32 %v2260_v59, %v4354_v56  ;;  %v2279_v34 = vpop.f32.mrf.mxu3 }
 0x31d   : > { %v2280_v52 = vadd.f32 %v2279_v34, %v4354_v56  ;;  %2345 = vmatpush.bf16.msrb.mxu1 %v2186_v0  ;;  %3076 = vmatmul.msk.bf16.vlgmr.msrb.gmra.mxu0 %vm2237_vm0, %v4281_v18 }
 0x31e   : > { %v2376_v20 = vmax.f32 %v2261_v9, 0.0  ;;  %v2493_v9 = vld [vmem:[%s4400_s25] sm:$0x77] }
 0x31f   : > { %v2377_v17 = vmax.f32 %v2280_v52, 0.0 }
 0x320   : > { %v2388_v40 = vpack.c.bf16 %v2376_v20, %v2370_v35 }
 0x321   : > { %v2389_v16 = vpack.c.bf16 %v2377_v17, %v2371_v37  ;;  %2346 = vmatpush.bf16.msrb.mxu1 %v2180_v22 }
 0x322   : > { %2411 = vmatpush.bf16.msra.mxu2 %v2388_v40 }
 0x323   : > { %2424 = vmatpush.bf16.msra.mxu3 %v2389_v16 }
 0x324   : > { %3078 = vmatmul.msk.bf16.vlgmr.msrb.gmra.mxu1 %vm2237_vm0, %v4281_v18 }
 0x326   : > { %v2291_v33 = vpop.f32.mrf.mxu2  ;;  %2412 = vmatpush.bf16.msra.mxu2 %v2382_v61 }
 0x327   : > { %2425 = vmatpush.bf16.msra.mxu3 %v2383_v48  ;;  %v2292_v36 = vadd.f32 %v2291_v33, %v4359_v50 }
 0x329   : > { %3080 = vmatmul.msk.bf16.vlgmr.msra.gmra.mxu2 %vm2401_vm1, %v4374_v42  ;;  %v2360_v44 = vmax.f32 %v2292_v36, 0.0 }
 0x32a   : > { %3081 = vmatmul.msk.bf16.vlgmr.msra.gmra.mxu3 %vm2401_vm1, %v4374_v42 }
 0x32d   : > { %v2310_v6 = vpop.f32.mrf.mxu3  ;;  %3077 = vmatmul.msk.bf16.gmra.mxu0 %vm2237_vm0, %v4293_v15 }
 0x32e   : > { %v2293_v18 = vpop.f32.mrf.mxu2  ;;  %v2311_v58 = vadd.f32 %v2310_v6, %v4359_v50 }
 0x32f   : > { %v2294_v32 = vadd.f32 %v2293_v18, %v4351_v51 }
 0x330   : > { %v2361_v31 = vmax.f32 %v2311_v58, 0.0 }
 0x331   : > { %v2366_v24 = vmax.f32 %v2294_v32, 0.0 }
 0x333   : > { %v2384_v38 = vpack.c.bf16 %v2366_v24, %v2360_v44 }
 0x334   : > { %3079 = vmatmul.msk.bf16.gmra.mxu1 %vm2237_vm0, %v4293_v15 }
 0x335   : > { %v2312_v29 = vpop.f32.mrf.mxu3 }
 0x336   : > { %v2296_v3 = vpop.f32.mrf.mxu2  ;;  %v2313_v53 = vadd.f32 %v2312_v29, %v4351_v51 }
 0x337   : > { %v2297_v30 = vadd.f32 %v2296_v3, %v4342_v13 }
 0x338   : > { %v2367_v60 = vmax.f32 %v2313_v53, 0.0 }
 0x339   : > { %v2372_v1 = vmax.f32 %v2297_v30, 0.0 }
 0x33a   : > { %v2385_v55 = vpack.c.bf16 %v2367_v60, %v2361_v31 }
 0x33d   : > { %v2315_v23 = vpop.f32.mrf.mxu3 }
 0x33e   : > { %v2298_v21 = vpop.f32.mrf.mxu2  ;;  %v2316_v7 = vadd.f32 %v2315_v23, %v4342_v13 }
 0x33f   : > { %v2299_v27 = vadd.f32 %v2298_v21, %v4354_v56 }
 0x340   : > { %v2373_v46 = vmax.f32 %v2316_v7, 0.0 }
 0x341   : > { %v2378_v39 = vmax.f32 %v2299_v27, 0.0  ;;  %v2496_v27 = vld [vmem:[%s4400_s25 + $0x8] sm:$0x77] }
 0x343   : > { %v2390_v5 = vpack.c.bf16 %v2378_v39, %v2372_v1 }
 0x345   : > { %v2317_v15 = vpop.f32.mrf.mxu3  ;;  %2437 = vmatpush.bf16.msrb.mxu2 %v2390_v5 }
 0x346   : > { %v2318_v8 = vadd.f32 %v2317_v15, %v4354_v56 }
 0x348   : > { %v2379_v10 = vmax.f32 %v2318_v8, 0.0 }
 0x349   : > { %2438 = vmatpush.bf16.msrb.mxu2 %v2384_v38 }
 0x34a   : > { %v2391_v26 = vpack.c.bf16 %v2379_v10, %v2373_v46 }
 0x34c   : > { %2450 = vmatpush.bf16.msrb.mxu3 %v2391_v26  ;;  %3082 = vmatmul.msk.bf16.vlgmr.msrb.gmra.mxu2 %vm2401_vm1, %v4374_v42 }
 0x350   : > { %2451 = vmatpush.bf16.msrb.mxu3 %v2385_v55 }
 0x353   : > { %3083 = vmatmul.msk.bf16.vlgmr.msrb.gmra.mxu3 %vm2401_vm1, %v4374_v42 }
 0x39a   : > { %v2329_v41 = vpop.f32.mrf.mxu0 }
 0x39b   : > { %v2330_v54 = vadd.f32 %v2329_v41, %v4359_v50 }
 0x39d   : > { %v2362_v25 = vmax.f32 %v2330_v54, 0.0 }
 0x3a1   : > { %v2348_v47 = vpop.f32.mrf.mxu1 }
 0x3a2   : > { %v2331_v57 = vpop.f32.mrf.mxu0  ;;  %v2349_v6 = vadd.f32 %v2348_v47, %v4359_v50 }
 0x3a3   : > { %v2332_v35 = vadd.f32 %v2331_v57, %v4351_v51 }
 0x3a4   : > { %v2363_v23 = vmax.f32 %v2349_v6, 0.0 }
 0x3a5   : > { %v2368_v40 = vmax.f32 %v2332_v35, 0.0 }
 0x3a7   : > { %v2386_v33 = vpack.c.bf16 %v2368_v40, %v2362_v25 }
 0x3a9   : > { %v2350_v12 = vpop.f32.mrf.mxu1 }
 0x3aa   : > { %v2334_v62 = vpop.f32.mrf.mxu0  ;;  %v2351_v61 = vadd.f32 %v2350_v12, %v4351_v51 }
 0x3ab   : > { %v2335_v63 = vadd.f32 %v2334_v62, %v4342_v13 }
 0x3ac   : > { %v2414_v43 = vpop.f32.mrf.mxu2  ;;  %v2369_v3 = vmax.f32 %v2351_v61, 0.0 }
 0x3ad   : > { %v2415_v0 = vadd.f32 %v2414_v43, %v2399_v11  ;;  %v2427_v28 = vpop.f32.mrf.mxu3  ;;  %v2374_v37 = vmax.f32 %v2335_v63, 0.0 }
 0x3ae   : > { %v2428_v59 = vadd.f32 %v2427_v28, %v2399_v11 }
 0x3b0   : > { %v2483_v34 = vpack.c.bf16 %v2428_v59, %v2415_v0 }
 0x3b1   : > { %v2353_v2 = vpop.f32.mrf.mxu1 }
 0x3b2   : > { %v2494_v52 = vsel %vm4402_vm8, %v2483_v34, %v2493_v9  ;;  %v2336_v4 = vpop.f32.mrf.mxu0  ;;  %v2354_v16 = vadd.f32 %v2353_v2, %v4342_v13  ;;  %v2387_v13 = vpack.c.bf16 %v2369_v3, %v2363_v23 }
 0x3b3   : > { %2495 = vst [vmem:[%s4400_s25] sm:$0x77] %v2494_v52  ;;  %v2337_v20 = vadd.f32 %v2336_v4, %v4354_v56 }
 0x3b4   : > { %v2416_v22 = vpop.f32.mrf.mxu2  ;;  %v2375_v18 = vmax.f32 %v2354_v16, 0.0 }
 0x3b5   : > { %v2380_v17 = vmax.f32 %v2337_v20, 0.0  ;;  %v2429_v45 = vpop.f32.mrf.mxu3 }
 0x3b7   : > { %v2392_v14 = vpack.c.bf16 %v2380_v17, %v2374_v37 }
 0x3b9   : > { %v2355_v19 = vpop.f32.mrf.mxu1  ;;  %2463 = vmatpush.bf16.msra.mxu0 %v2392_v14 }
 0x3ba   : > { %v2356_v48 = vadd.f32 %v2355_v19, %v4354_v56 }
 0x3bc   : > { %v2381_v29 = vmax.f32 %v2356_v48, 0.0 }
 0x3bd   : > { %2464 = vmatpush.bf16.msra.mxu0 %v2386_v33 }
 0x3be   : > { %v2393_v30 = vpack.c.bf16 %v2381_v29, %v2375_v18 }
 0x3c0   : > { %2476 = vmatpush.bf16.msra.mxu1 %v2393_v30  ;;  %3084 = vmatmul.msk.bf16.vlgmr.msra.gmra.mxu0 %vm2401_vm1, %v4374_v42 }
 0x3c4   : > { %2477 = vmatpush.bf16.msra.mxu1 %v2387_v13 }
 0x3c7   : > { %3085 = vmatmul.msk.bf16.vlgmr.msra.gmra.mxu1 %vm2401_vm1, %v4374_v42  ;;  %v2499_v42 = vld [vmem:[%s4400_s25 + $0x10] sm:$0x77] }
 0x3cf   : > { %v2440_v51 = vpop.f32.mrf.mxu2 }
 0x3d0   : > { %v2441_v50 = vadd.f32 %v2440_v51, %v2399_v11 }
 0x3d6   : > { %v2453_v56 = vpop.f32.mrf.mxu3 }
 0x3d7   : > { %v2454_v21 = vadd.f32 %v2453_v56, %v2399_v11  ;;  %v2442_v32 = vpop.f32.mrf.mxu2 }
 0x3d9   : > { %v2484_v36 = vpack.c.bf16 %v2454_v21, %v2441_v50 }
 0x3db   : > { %v2497_v1 = vsel %vm4402_vm8, %v2484_v36, %v2496_v27 }
 0x3dc   : > { %2498 = vst [vmem:[%s4400_s25 + $0x8] sm:$0x77] %v2497_v1 }
 0x3de   : > { %v2455_v39 = vpop.f32.mrf.mxu3 }
 0x43d   : > { %v2466_v24 = vpop.f32.mrf.mxu0 }
 0x43e   : > { %v2467_v7 = vadd.f32 %v2466_v24, %v2399_v11 }
 0x444   : > { %v2479_v5 = vpop.f32.mrf.mxu1 }
 0x445   : > { %v2480_v44 = vadd.f32 %v2479_v5, %v2399_v11  ;;  %v2468_v15 = vpop.f32.mrf.mxu0 }
 0x447   : > { %v2485_v53 = vpack.c.bf16 %v2480_v44, %v2467_v7 }
 0x449   : > { %v2500_v8 = vsel %vm4402_vm8, %v2485_v53, %v2499_v42 }
 0x44a   : > { %2501 = vst [vmem:[%s4400_s25 + $0x10] sm:$0x77] %v2500_v8 }
 0x44c   : > { %v2481_v38 = vpop.f32.mrf.mxu1 }
 0x44d PF: > { %s19_s11 = sadd.s32 1, %s3258_s11   ;;  %s4557_s30 = smov %s3254_s10 }
 0x44e   : > { %p16_p5 = scmp.ge.s32.totalorder %s19_s11, 4   ;;  %s4558_s10 = smov %s4560_s12 }
 0x450   :  { %18 = sbr.rel (!%p16_p5) target bundleno = 2 (0x2), region = 86 }

</bundles_post_ra>
